<compile_context>
chip_gen: v5e
topology: v5e:2x2
jax: 0.10.0
libtpu: 0.0.40
codegen_flags: <defaults>
</compile_context>

<pallas_src>
import math
from functools import partial

import jax
import jax.numpy as jnp
import numpy as np
from jax.experimental import pallas as pl
from jax.experimental.pallas import tpu as pltpu

# ----- module hyper-parameters (ContinuousRelativeRefractoryConv2D defaults) -----
ALPHA = 0.95                       # membrane decay
ALPHAS = 0.90                      # synaptic decay
ALPHARP = 0.65                     # refractory decay
WRP = 1.0                          # refractory weight
TAU_M = 1.0 / (1.0 - ALPHA)        # = 20
TAU_S = 1.0 / (1.0 - ALPHAS)       # = 10
STRIDE = 1
PADDING = 2
DILATION = 1


def _round_up(x, m):
    return (x + m - 1) // m * m


def _make_kernel(batch, cin, kh_, kw_, wp, n_wide, n_lane):
    """Per-timestep body: trace update + single-matmul conv + refractory."""
    offsets = [kh * wp + kw for kh in range(kh_) for kw in range(kw_)]

    def kernel(xp_ref, e0_in, e1_in, w_ref, b_ref, arp_in,
               out_ref, pv_ref, pvm_ref, e0_ref, e1_ref, arp_ref,
               patch_ref):
        t = pl.program_id(0)

        # ---- t == 0: seed the VMEM-resident state blocks, zero the patch
        #      scratch (its unwritten rows/lanes must stay exactly zero).
        @pl.when(t == 0)
        def _init():
            e0_ref[...] = e0_in[...]
            e1_ref[...] = e1_in[...]
            arp_ref[...] = arp_in[...]
            patch_ref[...] = jnp.zeros_like(patch_ref)

        # ---- synaptic / membrane traces (elementwise, lane-dense, VPU) ----
        x = xp_ref[0]                                   # (B*Cin, n_pad)
        eps0 = x * TAU_S + ALPHAS * e0_ref[...]
        eps1 = ALPHA * e1_ref[...] + eps0 * TAU_M
        e0_ref[...] = eps0                              # state carried in VMEM
        e1_ref[...] = eps1

        # ---- im2col: with stride=dilation=1 each (kh,kw) tap of the row-major
        #      padded image is a contiguous flat window -> static lane slices.
        for b in range(batch):
            rows = slice(b * cin, (b + 1) * cin)
            col0 = b * n_lane
            for ti, off in enumerate(offsets):
                patch_ref[ti * cin:(ti + 1) * cin, col0:col0 + n_wide] = (
                    eps1[rows, off:off + n_wide])

        # ---- conv as one MXU matmul + pre-broadcast bias (lane-dense) ----
        pvmem = jnp.dot(w_ref[...], patch_ref[...],
                        preferred_element_type=jnp.float32,
                        precision=jax.lax.Precision.HIGHEST) + b_ref[...]

        # ---- relative refractory dynamics ----
        arp = ALPHARP * arp_ref[...]
        outpvmem = pvmem + arp
        output = (outpvmem > 0).astype(jnp.float32)     # spiking output_act
        out_ref[0] = output
        pv_ref[0] = jax.nn.sigmoid(outpvmem)            # act = nn.Sigmoid()
        pvm_ref[0] = outpvmem
        arp_ref[...] = arp - output * WRP               # state carried in VMEM

    return kernel


def make_crr_conv2d_seq(T, batch, cin, cout, kh, kw, h, w):
    """Build a jitted full-sequence step and state helpers for fixed shapes."""
    assert STRIDE == 1 and DILATION == 1
    hp, wp = h + 2 * PADDING, w + 2 * PADDING
    hout = (h + 2 * PADDING - DILATION * (kh - 1) - 1) // STRIDE + 1
    wout = (w + 2 * PADDING - DILATION * (kw - 1) - 1) // STRIDE + 1
    n_wide = hout * wp                                   # conv canvas per batch
    n_lane = _round_up(n_wide, 128)                      # 360 -> 384 lane-dense
    n_pad = _round_up(max(hp * wp, (kh - 1) * wp + (kw - 1) + n_wide), 128)
    k_taps = kh * kw * cin                               # 36
    k_pad = _round_up(k_taps, 8)                         # 40 (sublane-aligned)
    bc = batch * cin                                     # 8 -> full sublanes
    nl = batch * n_lane                                  # 768 = 6 x 128 lanes

    state_shape = (bc, n_pad)
    arp_shape = (cout, nl)

    call = pl.pallas_call(
        _make_kernel(batch, cin, kh, kw, wp, n_wide, n_lane),
        grid=(T,),
        in_specs=[
            pl.BlockSpec((1, bc, n_pad), lambda t: (t, 0, 0)),  # x at step t
            pl.BlockSpec(state_shape, lambda t: (0, 0)),        # eps0 init
            pl.BlockSpec(state_shape, lambda t: (0, 0)),        # eps1 init
            pl.BlockSpec((cout, k_pad), lambda t: (0, 0)),      # weight (resident)
            pl.BlockSpec((cout, nl), lambda t: (0, 0)),         # bias (pre-broadcast)
            pl.BlockSpec(arp_shape, lambda t: (0, 0)),          # arp init
        ],
        out_specs=[
            pl.BlockSpec((1, cout, nl), lambda t: (t, 0, 0)),   # spikes
            pl.BlockSpec((1, cout, nl), lambda t: (t, 0, 0)),   # pv
            pl.BlockSpec((1, cout, nl), lambda t: (t, 0, 0)),   # outpvmem
            pl.BlockSpec(state_shape, lambda t: (0, 0)),        # eps0 final (carry)
            pl.BlockSpec(state_shape, lambda t: (0, 0)),        # eps1 final (carry)
            pl.BlockSpec(arp_shape, lambda t: (0, 0)),          # arp final (carry)
        ],
        out_shape=[
            jax.ShapeDtypeStruct((T, cout, nl), jnp.float32),
            jax.ShapeDtypeStruct((T, cout, nl), jnp.float32),
            jax.ShapeDtypeStruct((T, cout, nl), jnp.float32),
            jax.ShapeDtypeStruct(state_shape, jnp.float32),
            jax.ShapeDtypeStruct(state_shape, jnp.float32),
            jax.ShapeDtypeStruct(arp_shape, jnp.float32),
        ],
        scratch_shapes=[pltpu.VMEM((k_pad, nl), jnp.float32)],   # im2col patch
        input_output_aliases={1: 3, 2: 4, 5: 5},                 # in-place state
        compiler_params=pltpu.CompilerParams(
            dimension_semantics=("arbitrary",),   # state carries across T
            vmem_limit_bytes=32 * 1024 * 1024,
        ),
    )

    @partial(jax.jit, donate_argnums=(1,))
    def run_sequence(x_seq, state, wmat_pad, bias_wide):
        eps0_k, eps1_k, arp_k = state
        # one pad of the whole sequence into the flat lane-dense layout
        xp = jnp.pad(x_seq, ((0, 0), (0, 0), (0, 0),
                             (PADDING, PADDING), (PADDING, PADDING)))
        xp = xp.reshape(T, bc, hp * wp)
        xp = jnp.pad(xp, ((0, 0), (0, 0), (0, n_pad - hp * wp)))

        out_w, pv_w, pvm_w, e0n, e1n, arpn = call(
            xp, eps0_k, eps1_k, wmat_pad, bias_wide, arp_k)

        def crop(a):  # (T, Cout, B*n_lane) -> (T, B, Cout, Hout, Wout)
            a = a.reshape(T, cout, batch, n_lane)[:, :, :, :n_wide]
            a = a.reshape(T, cout, batch, hout, wp)[:, :, :, :, :wout]
            return jnp.transpose(a, (0, 2, 1, 3, 4))

        return (crop(out_w), crop(pv_w), crop(pvm_w)), (e0n, e1n, arpn)

    def init_state():
        return (jnp.zeros(state_shape, jnp.float32),
                jnp.zeros(state_shape, jnp.float32),
                jnp.zeros(arp_shape, jnp.float32))

    def prepare_params(weight, bias):
        # weight OIHW (Cout,Cin,KH,KW) -> (Cout, KH*KW*Cin), pad K 36->40
        wmat = jnp.transpose(weight, (0, 2, 3, 1)).reshape(cout, k_taps)
        wmat_pad = jnp.pad(wmat, ((0, 0), (0, k_pad - k_taps)))
        bias_wide = jnp.tile(bias.reshape(cout, 1), (1, nl))
        return wmat_pad, bias_wide

    def state_to_nchw(state):
        e0, e1, arp = state

        def unpad(a):
            a = a.reshape(batch, cin, n_pad)[:, :, :hp * wp]
            a = a.reshape(batch, cin, hp, wp)
            return a[:, :, PADDING:PADDING + h, PADDING:PADDING + w]

        arp_n = arp.reshape(cout, batch, n_lane)[:, :, :n_wide]
        arp_n = arp_n.reshape(cout, batch, hout, wp)[:, :, :, :wout]
        arp_n = jnp.transpose(arp_n, (1, 0, 2, 3))
        return unpad(e0), unpad(e1), arp_n

    return run_sequence, init_state, prepare_params, state_to_nchw


def reference_forward(x, eps0, eps1, arp, weight, bias):
    """Pure-JAX reference mirroring the PyTorch forward (for sanity check)."""
    eps0_n = x * TAU_S + ALPHAS * eps0
    eps1_n = ALPHA * eps1 + eps0_n * TAU_M
    pvmem = jax.lax.conv_general_dilated(
        eps1_n, weight, window_strides=(STRIDE, STRIDE),
        padding=((PADDING, PADDING), (PADDING, PADDING)),
        dimension_numbers=("NCHW", "OIHW", "NCHW"),
        precision=jax.lax.Precision.HIGHEST,
    ) + bias[None, :, None, None]
    arp_n = ALPHARP * arp
    outpvmem = pvmem + arp_n
    output = (outpvmem > 0).astype(jnp.float32)
    pv = jax.nn.sigmoid(outpvmem)
    arp_n = arp_n - output * WRP
    return (output, pv, outpvmem), (eps0_n, eps1_n, arp_n)


if __name__ == "__main__":
    T, B, Cin, Cout, H, W, K = 8, 2, 4, 8, 16, 16, 3
    Hout = (H + 2 * PADDING - DILATION * (K - 1) - 1) // STRIDE + 1
    Wout = Hout

    key = jax.random.PRNGKey(0)
    k_x, k_w, k_b = jax.random.split(key, 3)

    # deterministic parameter init matching reset_parameters()
    n = Cin * K * K
    stdv = 1.0 / math.sqrt(n) / 250.0
    weight = jax.random.uniform(k_w, (Cout, Cin, K, K), jnp.float32,
                                minval=-stdv * 0.01, maxval=stdv * 0.01)
    bias = jax.random.uniform(k_b, (Cout,), jnp.float32,
                              minval=-stdv, maxval=stdv)
    x_seq = jax.random.normal(k_x, (T, B, Cin, H, W), jnp.float32)

    run_sequence, init_state, prepare_params, state_to_nchw = \
        make_crr_conv2d_seq(T, B, Cin, Cout, K, K, H, W)
    wmat_pad, bias_wide = prepare_params(weight, bias)

    # the whole T-step sequence in ONE pallas_call (state threads in VMEM)
    state = init_state()
    (out_k, pv_k, pvm_k), state = run_sequence(x_seq, state, wmat_pad, bias_wide)
    jax.block_until_ready((out_k, pv_k, pvm_k, state))
    e0_k, e1_k, arp_k = state_to_nchw(state)

    # pure-JAX reference of the same T steps
    eps0 = jnp.zeros((B, Cin, H, W), jnp.float32)
    eps1 = jnp.zeros((B, Cin, H, W), jnp.float32)
    arp = jnp.zeros((B, Cout, Hout, Wout), jnp.float32)
    ref_pv, ref_pvm = [], []
    for t in range(T):
        (r_out, r_pv, r_pvm), (eps0, eps1, arp) = reference_forward(
            x_seq[t], eps0, eps1, arp, weight, bias)
        ref_pv.append(r_pv)
        ref_pvm.append(r_pvm)
    ref_pv = jnp.stack(ref_pv)
    ref_pvm = jnp.stack(ref_pvm)

    np.testing.assert_allclose(np.asarray(pvm_k), np.asarray(ref_pvm),
                               rtol=1e-4, atol=1e-5)
    np.testing.assert_allclose(np.asarray(pv_k), np.asarray(ref_pv),
                               rtol=1e-4, atol=1e-5)
    np.testing.assert_allclose(np.asarray(e0_k), np.asarray(eps0),
                               rtol=1e-4, atol=1e-5)
    np.testing.assert_allclose(np.asarray(e1_k), np.asarray(eps1),
                               rtol=1e-4, atol=1e-5)
    np.testing.assert_allclose(np.asarray(arp_k), np.asarray(arp),
                               rtol=1e-4, atol=1e-5)

    print("KERNEL_OK")
</pallas_src>

<mosaic_0001>
module attributes {stable_mosaic.version = 11 : i64} {
  func.func @kernel(%arg0: i32, %arg1: memref<1x8x512xf32, #tpu.memory_space<vmem>>, %arg2: memref<8x512xf32, #tpu.memory_space<vmem>>, %arg3: memref<8x512xf32, #tpu.memory_space<vmem>>, %arg4: memref<8x40xf32, #tpu.memory_space<vmem>>, %arg5: memref<8x768xf32, #tpu.memory_space<vmem>>, %arg6: memref<8x768xf32, #tpu.memory_space<vmem>>, %arg7: memref<1x8x768xf32, #tpu.memory_space<vmem>>, %arg8: memref<1x8x768xf32, #tpu.memory_space<vmem>>, %arg9: memref<1x8x768xf32, #tpu.memory_space<vmem>>, %arg10: memref<8x512xf32, #tpu.memory_space<vmem>>, %arg11: memref<8x512xf32, #tpu.memory_space<vmem>>, %arg12: memref<8x768xf32, #tpu.memory_space<vmem>>, %arg13: memref<40x768xf32, #tpu.memory_space<vmem>>) attributes {dimension_semantics = [#tpu.dimension_semantics<arbitrary>], iteration_bounds = array<i64: 8>, scalar_prefetch = 0 : i64, scratch_operands = 1 : i64, tpu.core_type = #tpu.core_type<tc>, window_params = [{transform_indices = @transform_0, window_bounds = array<i64: 1, 8, 512>}, {pipeline_mode = #tpu.pipeline_mode<synchronous>, transform_indices = @transform_1, window_bounds = array<i64: 8, 512>}, {pipeline_mode = #tpu.pipeline_mode<synchronous>, transform_indices = @transform_2, window_bounds = array<i64: 8, 512>}, {pipeline_mode = #tpu.pipeline_mode<synchronous>, transform_indices = @transform_3, window_bounds = array<i64: 8, 40>}, {pipeline_mode = #tpu.pipeline_mode<synchronous>, transform_indices = @transform_4, window_bounds = array<i64: 8, 768>}, {pipeline_mode = #tpu.pipeline_mode<synchronous>, transform_indices = @transform_5, window_bounds = array<i64: 8, 768>}, {transform_indices = @transform_6, window_bounds = array<i64: 1, 8, 768>}, {transform_indices = @transform_7, window_bounds = array<i64: 1, 8, 768>}, {transform_indices = @transform_8, window_bounds = array<i64: 1, 8, 768>}, {pipeline_mode = #tpu.pipeline_mode<synchronous>, transform_indices = @transform_9, window_bounds = array<i64: 8, 512>}, {pipeline_mode = #tpu.pipeline_mode<synchronous>, transform_indices = @transform_10, window_bounds = array<i64: 8, 512>}, {pipeline_mode = #tpu.pipeline_mode<synchronous>, transform_indices = @transform_11, window_bounds = array<i64: 8, 768>}]} {
    %c0_i32 = arith.constant 0 : i32
    %0 = arith.cmpi eq, %arg0, %c0_i32 : i32
    %1 = arith.extui %0 : i1 to i32
    %c0_i32_0 = arith.constant 0 : i32
    %2 = arith.cmpi ne, %1, %c0_i32_0 : i32
    scf.if %2 {
      %c0_65 = arith.constant 0 : index
      %c0_66 = arith.constant 0 : index
      %86 = vector.load %arg2[%c0_65, %c0_66] : memref<8x512xf32, #tpu.memory_space<vmem>>, vector<8x512xf32>
      %c0_67 = arith.constant 0 : index
      %c0_68 = arith.constant 0 : index
      %87 = vector.load %arg10[%c0_67, %c0_68] : memref<8x512xf32, #tpu.memory_space<vmem>>, vector<8x512xf32>
      tpu.vector_store %arg10[%c0_67, %c0_68], %86 {strides = array<i32>} : memref<8x512xf32, #tpu.memory_space<vmem>>, vector<8x512xf32>,
      %c0_69 = arith.constant 0 : index
      %c0_70 = arith.constant 0 : index
      %88 = vector.load %arg3[%c0_69, %c0_70] : memref<8x512xf32, #tpu.memory_space<vmem>>, vector<8x512xf32>
      %c0_71 = arith.constant 0 : index
      %c0_72 = arith.constant 0 : index
      %89 = vector.load %arg11[%c0_71, %c0_72] : memref<8x512xf32, #tpu.memory_space<vmem>>, vector<8x512xf32>
      tpu.vector_store %arg11[%c0_71, %c0_72], %88 {strides = array<i32>} : memref<8x512xf32, #tpu.memory_space<vmem>>, vector<8x512xf32>,
      %c0_73 = arith.constant 0 : index
      %c0_74 = arith.constant 0 : index
      %90 = vector.load %arg6[%c0_73, %c0_74] : memref<8x768xf32, #tpu.memory_space<vmem>>, vector<8x768xf32>
      %c0_75 = arith.constant 0 : index
      %c0_76 = arith.constant 0 : index
      %91 = vector.load %arg12[%c0_75, %c0_76] : memref<8x768xf32, #tpu.memory_space<vmem>>, vector<8x768xf32>
      tpu.vector_store %arg12[%c0_75, %c0_76], %90 {strides = array<i32>} : memref<8x768xf32, #tpu.memory_space<vmem>>, vector<8x768xf32>,
      %cst_77 = arith.constant 0.000000e+00 : f32
      %92 = vector.broadcast %cst_77 : f32 to vector<40x768xf32>
      %c0_78 = arith.constant 0 : index
      %c0_79 = arith.constant 0 : index
      %93 = vector.load %arg13[%c0_78, %c0_79] : memref<40x768xf32, #tpu.memory_space<vmem>>, vector<40x768xf32>
      tpu.vector_store %arg13[%c0_78, %c0_79], %92 {strides = array<i32>} : memref<40x768xf32, #tpu.memory_space<vmem>>, vector<40x768xf32>,
    } else {
    }
    %c0 = arith.constant 0 : index
    %c0_1 = arith.constant 0 : index
    %c0_2 = arith.constant 0 : index
    %3 = vector.load %arg1[%c0, %c0_1, %c0_2] : memref<1x8x512xf32, #tpu.memory_space<vmem>>, vector<1x8x512xf32>
    %4 = vector.shape_cast %3 : vector<1x8x512xf32> to vector<8x512xf32>
    %cst = arith.constant 1.000000e+01 : f32
    %5 = vector.broadcast %cst : f32 to vector<8x512xf32>
    %6 = arith.mulf %4, %5 : vector<8x512xf32>
    %c0_3 = arith.constant 0 : index
    %c0_4 = arith.constant 0 : index
    %7 = vector.load %arg10[%c0_3, %c0_4] : memref<8x512xf32, #tpu.memory_space<vmem>>, vector<8x512xf32>
    %cst_5 = arith.constant 0.899999976 : f32
    %8 = vector.broadcast %cst_5 : f32 to vector<8x512xf32>
    %9 = arith.mulf %8, %7 : vector<8x512xf32>
    %10 = arith.addf %6, %9 : vector<8x512xf32>
    %c0_6 = arith.constant 0 : index
    %c0_7 = arith.constant 0 : index
    %11 = vector.load %arg11[%c0_6, %c0_7] : memref<8x512xf32, #tpu.memory_space<vmem>>, vector<8x512xf32>
    %cst_8 = arith.constant 0.949999988 : f32
    %12 = vector.broadcast %cst_8 : f32 to vector<8x512xf32>
    %13 = arith.mulf %12, %11 : vector<8x512xf32>
    %cst_9 = arith.constant 2.000000e+01 : f32
    %14 = vector.broadcast %cst_9 : f32 to vector<8x512xf32>
    %15 = arith.mulf %10, %14 : vector<8x512xf32>
    %16 = arith.addf %13, %15 : vector<8x512xf32>
    %c0_10 = arith.constant 0 : index
    %c0_11 = arith.constant 0 : index
    %17 = vector.load %arg10[%c0_10, %c0_11] : memref<8x512xf32, #tpu.memory_space<vmem>>, vector<8x512xf32>
    tpu.vector_store %arg10[%c0_10, %c0_11], %10 {strides = array<i32>} : memref<8x512xf32, #tpu.memory_space<vmem>>, vector<8x512xf32>,
    %c0_12 = arith.constant 0 : index
    %c0_13 = arith.constant 0 : index
    %18 = vector.load %arg11[%c0_12, %c0_13] : memref<8x512xf32, #tpu.memory_space<vmem>>, vector<8x512xf32>
    tpu.vector_store %arg11[%c0_12, %c0_13], %16 {strides = array<i32>} : memref<8x512xf32, #tpu.memory_space<vmem>>, vector<8x512xf32>,
    %19 = vector.extract_strided_slice %16 {offsets = [0, 0], sizes = [4, 360], strides = [1, 1]} : vector<8x512xf32> to vector<4x360xf32>
    %c0_14 = arith.constant 0 : index
    %c0_15 = arith.constant 0 : index
    %20 = vector.load %arg13[%c0_14, %c0_15] : memref<40x768xf32, #tpu.memory_space<vmem>>, vector<4x360xf32>
    tpu.vector_store %arg13[%c0_14, %c0_15], %19 {strides = array<i32>} : memref<40x768xf32, #tpu.memory_space<vmem>>, vector<4x360xf32>,
    %21 = vector.extract_strided_slice %16 {offsets = [0, 1], sizes = [4, 360], strides = [1, 1]} : vector<8x512xf32> to vector<4x360xf32>
    %c4 = arith.constant 4 : index
    %c0_16 = arith.constant 0 : index
    %22 = vector.load %arg13[%c4, %c0_16] : memref<40x768xf32, #tpu.memory_space<vmem>>, vector<4x360xf32>
    tpu.vector_store %arg13[%c4, %c0_16], %21 {strides = array<i32>} : memref<40x768xf32, #tpu.memory_space<vmem>>, vector<4x360xf32>,
    %23 = vector.extract_strided_slice %16 {offsets = [0, 2], sizes = [4, 360], strides = [1, 1]} : vector<8x512xf32> to vector<4x360xf32>
    %c8 = arith.constant 8 : index
    %c0_17 = arith.constant 0 : index
    %24 = vector.load %arg13[%c8, %c0_17] : memref<40x768xf32, #tpu.memory_space<vmem>>, vector<4x360xf32>
    tpu.vector_store %arg13[%c8, %c0_17], %23 {strides = array<i32>} : memref<40x768xf32, #tpu.memory_space<vmem>>, vector<4x360xf32>,
    %25 = vector.extract_strided_slice %16 {offsets = [0, 20], sizes = [4, 360], strides = [1, 1]} : vector<8x512xf32> to vector<4x360xf32>
    %c12 = arith.constant 12 : index
    %c0_18 = arith.constant 0 : index
    %26 = vector.load %arg13[%c12, %c0_18] : memref<40x768xf32, #tpu.memory_space<vmem>>, vector<4x360xf32>
    tpu.vector_store %arg13[%c12, %c0_18], %25 {strides = array<i32>} : memref<40x768xf32, #tpu.memory_space<vmem>>, vector<4x360xf32>,
    %27 = vector.extract_strided_slice %16 {offsets = [0, 21], sizes = [4, 360], strides = [1, 1]} : vector<8x512xf32> to vector<4x360xf32>
    %c16 = arith.constant 16 : index
    %c0_19 = arith.constant 0 : index
    %28 = vector.load %arg13[%c16, %c0_19] : memref<40x768xf32, #tpu.memory_space<vmem>>, vector<4x360xf32>
    tpu.vector_store %arg13[%c16, %c0_19], %27 {strides = array<i32>} : memref<40x768xf32, #tpu.memory_space<vmem>>, vector<4x360xf32>,
    %29 = vector.extract_strided_slice %16 {offsets = [0, 22], sizes = [4, 360], strides = [1, 1]} : vector<8x512xf32> to vector<4x360xf32>
    %c20 = arith.constant 20 : index
    %c0_20 = arith.constant 0 : index
    %30 = vector.load %arg13[%c20, %c0_20] : memref<40x768xf32, #tpu.memory_space<vmem>>, vector<4x360xf32>
    tpu.vector_store %arg13[%c20, %c0_20], %29 {strides = array<i32>} : memref<40x768xf32, #tpu.memory_space<vmem>>, vector<4x360xf32>,
    %31 = vector.extract_strided_slice %16 {offsets = [0, 40], sizes = [4, 360], strides = [1, 1]} : vector<8x512xf32> to vector<4x360xf32>
    %c24 = arith.constant 24 : index
    %c0_21 = arith.constant 0 : index
    %32 = vector.load %arg13[%c24, %c0_21] : memref<40x768xf32, #tpu.memory_space<vmem>>, vector<4x360xf32>
    tpu.vector_store %arg13[%c24, %c0_21], %31 {strides = array<i32>} : memref<40x768xf32, #tpu.memory_space<vmem>>, vector<4x360xf32>,
    %33 = vector.extract_strided_slice %16 {offsets = [0, 41], sizes = [4, 360], strides = [1, 1]} : vector<8x512xf32> to vector<4x360xf32>
    %c28 = arith.constant 28 : index
    %c0_22 = arith.constant 0 : index
    %34 = vector.load %arg13[%c28, %c0_22] : memref<40x768xf32, #tpu.memory_space<vmem>>, vector<4x360xf32>
    tpu.vector_store %arg13[%c28, %c0_22], %33 {strides = array<i32>} : memref<40x768xf32, #tpu.memory_space<vmem>>, vector<4x360xf32>,
    %35 = vector.extract_strided_slice %16 {offsets = [0, 42], sizes = [4, 360], strides = [1, 1]} : vector<8x512xf32> to vector<4x360xf32>
    %c32 = arith.constant 32 : index
    %c0_23 = arith.constant 0 : index
    %36 = vector.load %arg13[%c32, %c0_23] : memref<40x768xf32, #tpu.memory_space<vmem>>, vector<4x360xf32>
    tpu.vector_store %arg13[%c32, %c0_23], %35 {strides = array<i32>} : memref<40x768xf32, #tpu.memory_space<vmem>>, vector<4x360xf32>,
    %37 = vector.extract_strided_slice %16 {offsets = [4, 0], sizes = [4, 360], strides = [1, 1]} : vector<8x512xf32> to vector<4x360xf32>
    %c0_24 = arith.constant 0 : index
    %c384 = arith.constant 384 : index
    %38 = vector.load %arg13[%c0_24, %c384] : memref<40x768xf32, #tpu.memory_space<vmem>>, vector<4x360xf32>
    tpu.vector_store %arg13[%c0_24, %c384], %37 {strides = array<i32>} : memref<40x768xf32, #tpu.memory_space<vmem>>, vector<4x360xf32>,
    %39 = vector.extract_strided_slice %16 {offsets = [4, 1], sizes = [4, 360], strides = [1, 1]} : vector<8x512xf32> to vector<4x360xf32>
    %c4_25 = arith.constant 4 : index
    %c384_26 = arith.constant 384 : index
    %40 = vector.load %arg13[%c4_25, %c384_26] : memref<40x768xf32, #tpu.memory_space<vmem>>, vector<4x360xf32>
    tpu.vector_store %arg13[%c4_25, %c384_26], %39 {strides = array<i32>} : memref<40x768xf32, #tpu.memory_space<vmem>>, vector<4x360xf32>,
    %41 = vector.extract_strided_slice %16 {offsets = [4, 2], sizes = [4, 360], strides = [1, 1]} : vector<8x512xf32> to vector<4x360xf32>
    %c8_27 = arith.constant 8 : index
    %c384_28 = arith.constant 384 : index
    %42 = vector.load %arg13[%c8_27, %c384_28] : memref<40x768xf32, #tpu.memory_space<vmem>>, vector<4x360xf32>
    tpu.vector_store %arg13[%c8_27, %c384_28], %41 {strides = array<i32>} : memref<40x768xf32, #tpu.memory_space<vmem>>, vector<4x360xf32>,
    %43 = vector.extract_strided_slice %16 {offsets = [4, 20], sizes = [4, 360], strides = [1, 1]} : vector<8x512xf32> to vector<4x360xf32>
    %c12_29 = arith.constant 12 : index
    %c384_30 = arith.constant 384 : index
    %44 = vector.load %arg13[%c12_29, %c384_30] : memref<40x768xf32, #tpu.memory_space<vmem>>, vector<4x360xf32>
    tpu.vector_store %arg13[%c12_29, %c384_30], %43 {strides = array<i32>} : memref<40x768xf32, #tpu.memory_space<vmem>>, vector<4x360xf32>,
    %45 = vector.extract_strided_slice %16 {offsets = [4, 21], sizes = [4, 360], strides = [1, 1]} : vector<8x512xf32> to vector<4x360xf32>
    %c16_31 = arith.constant 16 : index
    %c384_32 = arith.constant 384 : index
    %46 = vector.load %arg13[%c16_31, %c384_32] : memref<40x768xf32, #tpu.memory_space<vmem>>, vector<4x360xf32>
    tpu.vector_store %arg13[%c16_31, %c384_32], %45 {strides = array<i32>} : memref<40x768xf32, #tpu.memory_space<vmem>>, vector<4x360xf32>,
    %47 = vector.extract_strided_slice %16 {offsets = [4, 22], sizes = [4, 360], strides = [1, 1]} : vector<8x512xf32> to vector<4x360xf32>
    %c20_33 = arith.constant 20 : index
    %c384_34 = arith.constant 384 : index
    %48 = vector.load %arg13[%c20_33, %c384_34] : memref<40x768xf32, #tpu.memory_space<vmem>>, vector<4x360xf32>
    tpu.vector_store %arg13[%c20_33, %c384_34], %47 {strides = array<i32>} : memref<40x768xf32, #tpu.memory_space<vmem>>, vector<4x360xf32>,
    %49 = vector.extract_strided_slice %16 {offsets = [4, 40], sizes = [4, 360], strides = [1, 1]} : vector<8x512xf32> to vector<4x360xf32>
    %c24_35 = arith.constant 24 : index
    %c384_36 = arith.constant 384 : index
    %50 = vector.load %arg13[%c24_35, %c384_36] : memref<40x768xf32, #tpu.memory_space<vmem>>, vector<4x360xf32>
    tpu.vector_store %arg13[%c24_35, %c384_36], %49 {strides = array<i32>} : memref<40x768xf32, #tpu.memory_space<vmem>>, vector<4x360xf32>,
    %51 = vector.extract_strided_slice %16 {offsets = [4, 41], sizes = [4, 360], strides = [1, 1]} : vector<8x512xf32> to vector<4x360xf32>
    %c28_37 = arith.constant 28 : index
    %c384_38 = arith.constant 384 : index
    %52 = vector.load %arg13[%c28_37, %c384_38] : memref<40x768xf32, #tpu.memory_space<vmem>>, vector<4x360xf32>
    tpu.vector_store %arg13[%c28_37, %c384_38], %51 {strides = array<i32>} : memref<40x768xf32, #tpu.memory_space<vmem>>, vector<4x360xf32>,
    %53 = vector.extract_strided_slice %16 {offsets = [4, 42], sizes = [4, 360], strides = [1, 1]} : vector<8x512xf32> to vector<4x360xf32>
    %c32_39 = arith.constant 32 : index
    %c384_40 = arith.constant 384 : index
    %54 = vector.load %arg13[%c32_39, %c384_40] : memref<40x768xf32, #tpu.memory_space<vmem>>, vector<4x360xf32>
    tpu.vector_store %arg13[%c32_39, %c384_40], %53 {strides = array<i32>} : memref<40x768xf32, #tpu.memory_space<vmem>>, vector<4x360xf32>,
    %c0_41 = arith.constant 0 : index
    %c0_42 = arith.constant 0 : index
    %55 = vector.load %arg4[%c0_41, %c0_42] : memref<8x40xf32, #tpu.memory_space<vmem>>, vector<8x40xf32>
    %c0_43 = arith.constant 0 : index
    %c0_44 = arith.constant 0 : index
    %56 = vector.load %arg13[%c0_43, %c0_44] : memref<40x768xf32, #tpu.memory_space<vmem>>, vector<40x768xf32>
    %cst_45 = arith.constant dense<0.000000e+00> : vector<8x768xf32>
    %57 = tpu.matmul %55, %56, %cst_45 {dimension_numbers = #tpu.dot_dimension_numbers<[1], [0], [0], [1], [0, 0, 1, 1], [], []>, precision = #tpu.contract_precision<fp32>} : vector<8x40xf32>, vector<40x768xf32>, vector<8x768xf32> -> vector<8x768xf32>
    %c0_46 = arith.constant 0 : index
    %c0_47 = arith.constant 0 : index
    %58 = vector.load %arg5[%c0_46, %c0_47] : memref<8x768xf32, #tpu.memory_space<vmem>>, vector<8x768xf32>
    %59 = arith.addf %57, %58 : vector<8x768xf32>
    %c0_48 = arith.constant 0 : index
    %c0_49 = arith.constant 0 : index
    %60 = vector.load %arg12[%c0_48, %c0_49] : memref<8x768xf32, #tpu.memory_space<vmem>>, vector<8x768xf32>
    %cst_50 = arith.constant 6.500000e-01 : f32
    %61 = vector.broadcast %cst_50 : f32 to vector<8x768xf32>
    %62 = arith.mulf %61, %60 : vector<8x768xf32>
    %63 = arith.addf %59, %62 : vector<8x768xf32>
    %cst_51 = arith.constant 0.000000e+00 : f32
    %64 = vector.broadcast %cst_51 : f32 to vector<8x768xf32>
    %65 = arith.cmpf ogt, %63, %64 : vector<8x768xf32>
    %66 = arith.extui %65 : vector<8x768xi1> to vector<8x768xi32>
    %67 = arith.sitofp %66 : vector<8x768xi32> to vector<8x768xf32>
    %c0_52 = arith.constant 0 : index
    %c0_53 = arith.constant 0 : index
    %c0_54 = arith.constant 0 : index
    %68 = vector.load %arg7[%c0_52, %c0_53, %c0_54] : memref<1x8x768xf32, #tpu.memory_space<vmem>>, vector<1x8x768xf32>
    %69 = vector.shape_cast %68 : vector<1x8x768xf32> to vector<8x768xf32>
    %70 = vector.shape_cast %67 : vector<8x768xf32> to vector<1x8x768xf32>
    tpu.vector_store %arg7[%c0_52, %c0_53, %c0_54], %70 {strides = array<i32>} : memref<1x8x768xf32, #tpu.memory_space<vmem>>, vector<1x8x768xf32>,
    %71 = arith.negf %63 : vector<8x768xf32>
    %72 = math.exp %71 : vector<8x768xf32>
    %cst_55 = arith.constant 1.000000e+00 : f32
    %73 = vector.broadcast %cst_55 : f32 to vector<8x768xf32>
    %74 = arith.addf %73, %72 : vector<8x768xf32>
    %75 = arith.divf %73, %74 : vector<8x768xf32>
    %c0_56 = arith.constant 0 : index
    %c0_57 = arith.constant 0 : index
    %c0_58 = arith.constant 0 : index
    %76 = vector.load %arg8[%c0_56, %c0_57, %c0_58] : memref<1x8x768xf32, #tpu.memory_space<vmem>>, vector<1x8x768xf32>
    %77 = vector.shape_cast %76 : vector<1x8x768xf32> to vector<8x768xf32>
    %78 = vector.shape_cast %75 : vector<8x768xf32> to vector<1x8x768xf32>
    tpu.vector_store %arg8[%c0_56, %c0_57, %c0_58], %78 {strides = array<i32>} : memref<1x8x768xf32, #tpu.memory_space<vmem>>, vector<1x8x768xf32>,
    %c0_59 = arith.constant 0 : index
    %c0_60 = arith.constant 0 : index
    %c0_61 = arith.constant 0 : index
    %79 = vector.load %arg9[%c0_59, %c0_60, %c0_61] : memref<1x8x768xf32, #tpu.memory_space<vmem>>, vector<1x8x768xf32>
    %80 = vector.shape_cast %79 : vector<1x8x768xf32> to vector<8x768xf32>
    %81 = vector.shape_cast %63 : vector<8x768xf32> to vector<1x8x768xf32>
    tpu.vector_store %arg9[%c0_59, %c0_60, %c0_61], %81 {strides = array<i32>} : memref<1x8x768xf32, #tpu.memory_space<vmem>>, vector<1x8x768xf32>,
    %cst_62 = arith.constant 1.000000e+00 : f32
    %82 = vector.broadcast %cst_62 : f32 to vector<8x768xf32>
    %83 = arith.mulf %67, %82 : vector<8x768xf32>
    %84 = arith.subf %62, %83 : vector<8x768xf32>
    %c0_63 = arith.constant 0 : index
    %c0_64 = arith.constant 0 : index
    %85 = vector.load %arg12[%c0_63, %c0_64] : memref<8x768xf32, #tpu.memory_space<vmem>>, vector<8x768xf32>
    tpu.vector_store %arg12[%c0_63, %c0_64], %84 {strides = array<i32>} : memref<8x768xf32, #tpu.memory_space<vmem>>, vector<8x768xf32>,
    return
  }
  func.func @transform_0(%arg0: i32) -> (i32, i32, i32) {
    %c0_i32 = arith.constant 0 : i32
    %c0_i32_0 = arith.constant 0 : i32
    %c0_i32_1 = arith.constant 0 : i32
    return %arg0, %c0_i32, %c0_i32_0 : i32, i32, i32
  }
  func.func @transform_1(%arg0: i32) -> (i32, i32) {
    %c0_i32 = arith.constant 0 : i32
    %c0_i32_0 = arith.constant 0 : i32
    %c0_i32_1 = arith.constant 0 : i32
    return %c0_i32, %c0_i32_0 : i32, i32
  }
  func.func @transform_2(%arg0: i32) -> (i32, i32) {
    %c0_i32 = arith.constant 0 : i32
    %c0_i32_0 = arith.constant 0 : i32
    %c0_i32_1 = arith.constant 0 : i32
    return %c0_i32, %c0_i32_0 : i32, i32
  }
  func.func @transform_3(%arg0: i32) -> (i32, i32) {
    %c0_i32 = arith.constant 0 : i32
    %c0_i32_0 = arith.constant 0 : i32
    %c0_i32_1 = arith.constant 0 : i32
    return %c0_i32, %c0_i32_0 : i32, i32
  }
  func.func @transform_4(%arg0: i32) -> (i32, i32) {
    %c0_i32 = arith.constant 0 : i32
    %c0_i32_0 = arith.constant 0 : i32
    %c0_i32_1 = arith.constant 0 : i32
    return %c0_i32, %c0_i32_0 : i32, i32
  }
  func.func @transform_5(%arg0: i32) -> (i32, i32) {
    %c0_i32 = arith.constant 0 : i32
    %c0_i32_0 = arith.constant 0 : i32
    %c0_i32_1 = arith.constant 0 : i32
    return %c0_i32, %c0_i32_0 : i32, i32
  }
  func.func @transform_6(%arg0: i32) -> (i32, i32, i32) {
    %c0_i32 = arith.constant 0 : i32
    %c0_i32_0 = arith.constant 0 : i32
    %c0_i32_1 = arith.constant 0 : i32
    return %arg0, %c0_i32, %c0_i32_0 : i32, i32, i32
  }
  func.func @transform_7(%arg0: i32) -> (i32, i32, i32) {
    %c0_i32 = arith.constant 0 : i32
    %c0_i32_0 = arith.constant 0 : i32
    %c0_i32_1 = arith.constant 0 : i32
    return %arg0, %c0_i32, %c0_i32_0 : i32, i32, i32
  }
  func.func @transform_8(%arg0: i32) -> (i32, i32, i32) {
    %c0_i32 = arith.constant 0 : i32
    %c0_i32_0 = arith.constant 0 : i32
    %c0_i32_1 = arith.constant 0 : i32
    return %arg0, %c0_i32, %c0_i32_0 : i32, i32, i32
  }
  func.func @transform_9(%arg0: i32) -> (i32, i32) {
    %c0_i32 = arith.constant 0 : i32
    %c0_i32_0 = arith.constant 0 : i32
    %c0_i32_1 = arith.constant 0 : i32
    return %c0_i32, %c0_i32_0 : i32, i32
  }
  func.func @transform_10(%arg0: i32) -> (i32, i32) {
    %c0_i32 = arith.constant 0 : i32
    %c0_i32_0 = arith.constant 0 : i32
    %c0_i32_1 = arith.constant 0 : i32
    return %c0_i32, %c0_i32_0 : i32, i32
  }
  func.func @transform_11(%arg0: i32) -> (i32, i32) {
    %c0_i32 = arith.constant 0 : i32
    %c0_i32_0 = arith.constant 0 : i32
    %c0_i32_1 = arith.constant 0 : i32
    return %c0_i32, %c0_i32_0 : i32, i32
  }
}

</mosaic_0001>

<bundles_post_ra>
// kernel: run_sequence.1
= control target key start
LH: loop header
LB: loop body
LE: loop exit
PB: predicated region body
PF: predicated region fallthrough
CT: control target
= control target key end

     0   :  { %s2473_s17 = smov 0   ;;  %s3302_s0 = inlined_call_operand.vmem [shape: f32[8,8,512], index: 0, kind: input, shape index: {}]   ;;  %s3303_s1 = inlined_call_operand.vmem [shape: f32[8,512], index: 1, kind: input, shape index: {}, may-alias: {1,9}]   ;;  %s3304_s2 = inlined_call_operand.vmem [shape: f32[8,512], index: 2, kind: input, shape index: {}, may-alias: {2,10}]   ;;  %s3305_s3 = inlined_call_operand.vmem [shape: f32[8,40], index: 3, kind: input, shape index: {}]   ;;  %s3306_s4 = inlined_call_operand.vmem [shape: f32[8,768], index: 4, kind: input, shape index: {}]   ;;  %s3307_s5 = inlined_call_operand.vmem [shape: f32[8,768], index: 5, kind: input, shape index: {}, may-alias: {5,11}]   ;;  %s3308_s6 = inlined_call_operand.vmem [shape: f32[8,8,768], index: 6, kind: output, shape index: {0}]   ;;  %s3309_s7 = inlined_call_operand.vmem [shape: f32[8,8,768], index: 7, kind: output, shape index: {1}]   ;;  %s3310_s8 = inlined_call_operand.vmem [shape: f32[8,8,768], index: 8, kind: output, shape index: {2}]   ;;  %s3311_s9 = inlined_call_operand.vmem [shape: f32[8,512], index: 9, kind: output, shape index: {3}, may-alias: {1,9}]   ;;  %s3312_s10 = inlined_call_operand.vmem [shape: f32[8,512], index: 10, kind: output, shape index: {4}, may-alias: {2,10}]   ;;  %s3313_s11 = inlined_call_operand.vmem [shape: f32[8,768], index: 11, kind: output, shape index: {5}, may-alias: {5,11}]  }
   0x1 LB: > { %s2326_s18 = sadd.s32 4294967295, %s2401_s17   ;;  %p2330_p0 = scmp.ge.s32.totalorder %s2401_s17, 1  ;;  %s2401_s17 = sphi %s2473_s17, %s22_s17  }
   0x2   : > { %p333_p1 = scmp.lt.s32.totalorder %s2401_s17, 9 }
   0x4   : > { %p334_p2 = pnand %p2330_p0, %p333_p1 }
   0x5   : > { %p383_p3 = scmp.lt.s32.totalorder (!%p334_p2), %s2326_s18, 7  ;;  %p2336_p4 = scmp.ne.s32.totalorder (!%p334_p2), %s2326_s18, 0 }
   0x6   : > { %337 = sbr.rel (%p334_p2) target bundleno = 530 (0x212), region = 44 }
   0xb   : > { %s384_s19 = scalar_select %p383_p3, %s2326_s18, 7 }
   0xc   : > { %406 = sbr.rel (%p2336_p4) target bundleno = 62 (0x3e), region = 48 }
   0xd   : > { %s2351_s20 = sshll.u32 %s384_s19, 5  ;;  %s2352_s21 = smul.u32 48, %s384_s19 }
   0xe   : > { %s2484_s24 = scalar_lea.vmem %s3302_s0, %s2351_s20 }
   0xf   : > { %s2489_s27 = scalar_lea.vmem %s3308_s6, %s2352_s21  ;;  %s2494_s30 = scalar_lea.vmem %s3309_s7, %s2352_s21 }
  0x10   : > { %s2499_s14 = scalar_lea.vmem %s3310_s8, %s2352_s21 }
  0x11   : > { %v407_v0 = vld [vmem:[%s3303_s1] sm:$0xff]  ;;  %v408_v1 = vld [vmem:[%s3303_s1 + $0x8] sm:$0xff]  ;;  %v409_v2 = vld [vmem:[%s3303_s1 + $0x10] sm:$0xff]  ;;  %v2403_v14 = vmov 0.0  }
  0x12   : > { %411 = vst [vmem:[%s3311_s9] sm:$0xff] %v407_v0  ;;  %v415_v4 = vld [vmem:[%s3304_s2] sm:$0xff]  ;;  %v416_v5 = vld [vmem:[%s3304_s2 + $0x8] sm:$0xff]  ;;  %v417_v6 = vld [vmem:[%s3304_s2 + $0x10] sm:$0xff] }
  0x13   : > { %419 = vst [vmem:[%s3312_s10] sm:$0xff] %v415_v4  ;;  %v423_v8 = vld [vmem:[%s3307_s5] sm:$0xff]  ;;  %v424_v9 = vld [vmem:[%s3307_s5 + $0x8] sm:$0xff]  ;;  %v425_v10 = vld [vmem:[%s3307_s5 + $0x10] sm:$0xff] }
  0x14   : > { %429 = vst [vmem:[%s3313_s11] sm:$0xff] %v423_v8 }
  0x15   : > { %435 = vst [vmem:[#allocation2] sm:$0xff] %v2403_v14 }
  0x16   : > { %436 = vst [vmem:[#allocation2 + $0x8] sm:$0xff] %v2403_v14 }
  0x17   : > { %437 = vst [vmem:[#allocation2 + $0x10] sm:$0xff] %v2403_v14 }
  0x18   : > { %438 = vst [vmem:[#allocation2 + $0x18] sm:$0xff] %v2403_v14 }
  0x19   : > { %v410_v3 = vld [vmem:[%s3303_s1 + $0x18] sm:$0xff]  ;;  %439 = vst [vmem:[#allocation2 + $0x20] sm:$0xff] %v2403_v14 }
  0x1a   : > { %412 = vst [vmem:[%s3311_s9 + $0x8] sm:$0xff] %v408_v1  ;;  %v418_v7 = vld [vmem:[%s3304_s2 + $0x18] sm:$0xff] }
  0x1b   : > { %413 = vst [vmem:[%s3311_s9 + $0x10] sm:$0xff] %v409_v2  ;;  %v426_v11 = vld [vmem:[%s3307_s5 + $0x18] sm:$0xff] }
  0x1c   : > { %414 = vst [vmem:[%s3311_s9 + $0x18] sm:$0xff] %v410_v3 }
  0x1d   : > { %420 = vst [vmem:[%s3312_s10 + $0x8] sm:$0xff] %v416_v5 }
  0x1e   : > { %421 = vst [vmem:[%s3312_s10 + $0x10] sm:$0xff] %v417_v6 }
  0x1f   : > { %422 = vst [vmem:[%s3312_s10 + $0x18] sm:$0xff] %v418_v7 }
  0x20   : > { %430 = vst [vmem:[%s3313_s11 + $0x8] sm:$0xff] %v424_v9 }
  0x21   : > { %440 = vst [vmem:[#allocation2 + $0x28] sm:$0xff] %v2403_v14 }
  0x22   : > { %441 = vst [vmem:[#allocation2 + $0x30] sm:$0xff] %v2403_v14 }
  0x23   : > { %442 = vst [vmem:[#allocation2 + $0x38] sm:$0xff] %v2403_v14 }
  0x24   : > { %443 = vst [vmem:[#allocation2 + $0x40] sm:$0xff] %v2403_v14 }
  0x25   : > { %444 = vst [vmem:[#allocation2 + $0x48] sm:$0xff] %v2403_v14 }
  0x26   : > { %445 = vst [vmem:[#allocation2 + $0x50] sm:$0xff] %v2403_v14 }
  0x27   : > { %v427_v12 = vld [vmem:[%s3307_s5 + $0x20] sm:$0xff]  ;;  %446 = vst [vmem:[#allocation2 + $0x58] sm:$0xff] %v2403_v14 }
  0x28   : > { %431 = vst [vmem:[%s3313_s11 + $0x10] sm:$0xff] %v425_v10 }
  0x29   : > { %447 = vst [vmem:[#allocation2 + $0x60] sm:$0xff] %v2403_v14 }
  0x2a   : > { %448 = vst [vmem:[#allocation2 + $0x68] sm:$0xff] %v2403_v14 }
  0x2b   : > { %449 = vst [vmem:[#allocation2 + $0x70] sm:$0xff] %v2403_v14 }
  0x2c   : > { %450 = vst [vmem:[#allocation2 + $0x78] sm:$0xff] %v2403_v14 }
  0x2d   : > { %451 = vst [vmem:[#allocation2 + $0x80] sm:$0xff] %v2403_v14 }
  0x2e   : > { %452 = vst [vmem:[#allocation2 + $0x88] sm:$0xff] %v2403_v14 }
  0x2f   : > { %v428_v13 = vld [vmem:[%s3307_s5 + $0x28] sm:$0xff]  ;;  %453 = vst [vmem:[#allocation2 + $0x90] sm:$0xff] %v2403_v14 }
  0x30   : > { %432 = vst [vmem:[%s3313_s11 + $0x18] sm:$0xff] %v426_v11 }
  0x31   : > { %433 = vst [vmem:[%s3313_s11 + $0x20] sm:$0xff] %v427_v12 }
  0x32   : > { %434 = vst [vmem:[%s3313_s11 + $0x28] sm:$0xff] %v428_v13 }
  0x33   : > { %454 = vst [vmem:[#allocation2 + $0x98] sm:$0xff] %v2403_v14 }
  0x34   : > { %455 = vst [vmem:[#allocation2 + $0xa0] sm:$0xff] %v2403_v14 }
  0x35   : > { %456 = vst [vmem:[#allocation2 + $0xa8] sm:$0xff] %v2403_v14 }
  0x36   : > { %457 = vst [vmem:[#allocation2 + $0xb0] sm:$0xff] %v2403_v14 }
  0x37   : > { %458 = vst [vmem:[#allocation2 + $0xb8] sm:$0xff] %v2403_v14 }
  0x38   : > { %459 = vst [vmem:[#allocation2 + $0xc0] sm:$0xff] %v2403_v14 }
  0x39   : > { %460 = vst [vmem:[#allocation2 + $0xc8] sm:$0xff] %v2403_v14 }
  0x3a   : > { %461 = vst [vmem:[#allocation2 + $0xd0] sm:$0xff] %v2403_v14 }
  0x3b   : > { %462 = vst [vmem:[#allocation2 + $0xd8] sm:$0xff] %v2403_v14 }
  0x3c   : > { %463 = vst [vmem:[#allocation2 + $0xe0] sm:$0xff] %v2403_v14 }
  0x3d   : > { %464 = vst [vmem:[#allocation2 + $0xe8] sm:$0xff] %v2403_v14 }
  0x3e PF: > { %v465_v15 = vld [vmem:[%s2484_s24] sm:$0xff]  ;;  %v466_v20 = vld [vmem:[%s2484_s24 + $0x8] sm:$0xff]  ;;  %v467_v28 = vld [vmem:[%s2484_s24 + $0x10] sm:$0xff]  ;;  %s2404_s19 = smov 88   ;;  %s2405_s23 = smov 86   ;;  %vm623_vm0 = vcmask 711680  }
  0x3f   : > { %v473_v16 = vld [vmem:[%s3311_s9] sm:$0xff]  ;;  %v469_v18 = vmul.f32 10.0, %v465_v15  ;;  %v474_v21 = vld [vmem:[%s3311_s9 + $0x8] sm:$0xff]  ;;  %v470_v25 = vmul.f32 10.0, %v466_v20  ;;  %v475_v29 = vld [vmem:[%s3311_s9 + $0x10] sm:$0xff]  ;;  %v471_v32 = vmul.f32 10.0, %v467_v28 }
  0x40   : > { %v485_v17 = vld [vmem:[%s3312_s10] sm:$0xff]  ;;  %v477_v19 = vmul.f32 0.9, %v473_v16  ;;  %v486_v22 = vld [vmem:[%s3312_s10 + $0x8] sm:$0xff]  ;;  %v478_v26 = vmul.f32 0.9, %v474_v21 }
  0x41   : > { %v489_v24 = vmul.f32 0.95, %v485_v17  ;;  %v490_v27 = vmul.f32 0.95, %v486_v22  ;;  %v479_v33 = vmul.f32 0.9, %v475_v29 }
  0x42   : > { %v481_v23 = vadd.f32 %v477_v19, %v469_v18  ;;  %v482_v31 = vadd.f32 %v478_v26, %v470_v25  ;;  %v487_v37 = vld [vmem:[%s3312_s10 + $0x10] sm:$0xff]  ;;  %s2406_s25 = smov 87   ;;  %s2407_s13 = smov 107   ;;  %v468_v44 = vld [vmem:[%s2484_s24 + $0x18] sm:$0xff]  ;;  %vm604_vm1 = vcmask 719872   ;;  %vm641_vm2 = vcmask 703488  }
  0x43   : > { %v483_v36 = vadd.f32 %v479_v33, %v471_v32  ;;  %v491_v40 = vmul.f32 0.95, %v487_v37  ;;  %s2408_s15 = smov 106   ;;  %v476_v45 = vld [vmem:[%s3311_s9 + $0x18] sm:$0xff]  ;;  %s2409_s22 = smov 126   ;;  %v472_v46 = vmul.f32 10.0, %v468_v44 }
  0x44   : > { %v493_v30 = vmul.f32 20.0, %v481_v23  ;;  %501 = vst [vmem:[%s3311_s9] sm:$0xff] %v481_v23  ;;  %v494_v35 = vmul.f32 20.0, %v482_v31  ;;  %v480_v47 = vmul.f32 0.9, %v476_v45  ;;  %v488_v49 = vld [vmem:[%s3312_s10 + $0x18] sm:$0xff]  ;;  %s2410_s18 = smov 108  }
  0x45   : > { %502 = vst [vmem:[%s3311_s9 + $0x8] sm:$0xff] %v482_v31  ;;  %v495_v41 = vmul.f32 20.0, %v483_v36  ;;  %v492_v50 = vmul.f32 0.95, %v488_v49  ;;  %s2411_s16 = smov 127   ;;  %vm571_vm3 = vcmask 875520  }
  0x46   : > { %v2606_v34 = vadd.f32 %v493_v30, %v489_v24  ;;  %v2625_v39 = vadd.f32 %v494_v35, %v490_v27  ;;  %503 = vst [vmem:[%s3311_s9 + $0x10] sm:$0xff] %v483_v36  ;;  %v484_v48 = vadd.f32 %v480_v47, %v472_v46  ;;  %vm511_vm4 = vcmask 846848   ;;  %v778_v27 = vld [vmem:[%s3305_s3] sm:$0xff] }
  0x47   : > { %v2637_v43 = vadd.f32 %v495_v41, %v491_v40  ;;  %vm541_vm5 = vcmask 1031168   ;;  %vm586_vm6 = vcmask 867328   ;;  %vm533_vm7 = vcmask 850948  }
  0x48   : > { %596 = vrot.lane.b32.xlu1 %v2606_v34, %s2404_s19  ;;  %505 = vst [vmem:[%s3312_s10] sm:$0xff] %v2606_v34  ;;  %633 = vrot.lane.b32.xlu0 %v2606_v34, %s2405_s23  ;;  %v2623_v38 = vrot.slane %v2606_v34, 4  ;;  %v517_v42 = vrot.slane %v2625_v39, 4  ;;  %v496_v51 = vmul.f32 20.0, %v484_v48  ;;  %vm815_vm8 = vcmask 326656  }
  0x49   : > { %509 = vst [vmem:[#allocation2] sm:$0xf] %v2606_v34  ;;  %v518_v53 = vrot.slane %v2637_v43, 4  ;;  %vm556_vm9 = vcmask 883712   ;;  %v817_v30 = vsel %vm815_vm8, %v778_v27, 0  ;;  %vm525_vm10 = vcmask 1039360  }
  0x4a   : > { %615 = vrot.lane.b32.xlu2 %v2623_v38, %s2406_s25  ;;  %654 = vst [vmem:[#allocation2 + $0x18] sm:$0xf] %v2623_v38  ;;  %v2672_v52 = vadd.f32 %v496_v51, %v492_v50  ;;  %v2814_v36 = vand.u32 4294901760, %v817_v30 }
  0x4b   : > { %506 = vst [vmem:[%s3312_s10 + $0x8] sm:$0xff] %v2625_v39 }
  0x4c   : > { %510 = vst [vmem:[#allocation2 + $0x8] sm:$0xf] %v2625_v39  ;;  %v2698_v54 = vrot.slane %v2672_v52, 4  ;;  %v2826_v40 = vsub.f32 %v817_v30, %v2814_v36 }
  0x4d   : > { %655 = vst [vmem:[#allocation2 + $0x20] sm:$0xf] %v517_v42 }
  0x4e   : > { %507 = vst [vmem:[%s3312_s10 + $0x10] sm:$0xff] %v2637_v43  ;;  %v2837_v51 = vand.u32 4294901760, %v2826_v40 }
  0x4f   : > { %504 = vst [vmem:[%s3311_s9 + $0x18] sm:$0xff] %v484_v48 }
  0x50   : > { %598 = vrot.lane.b32.xlu1 %v2625_v39, %s2404_s19  ;;  %635 = vrot.lane.b32.xlu0 %v2625_v39, %s2405_s23  ;;  %508 = vst [vmem:[%s3312_s10 + $0x18] sm:$0xff] %v2672_v52 }
  0x51   : > { %512 = vst.msk [vmem:[#allocation2 + $0x10] sm:$0xf] %vm511_vm4, %v2637_v43 }
  0x52   : > { %617 = vrot.lane.b32.xlu2 %v517_v42, %s2406_s25  ;;  %656 = vst.msk [vmem:[#allocation2 + $0x28] sm:$0xf] %vm511_vm4, %v518_v53 }
  0x58   : > { %567 = vrot.lane.b32.xlu1 %v2625_v39, %s2407_s13  ;;  %565 = vrot.lane.b32.xlu0 %v2606_v34, %s2407_s13 }
  0x5a   : > { %580 = vrot.lane.b32.xlu2 %v2623_v38, %s2408_s15 }
  0x60   : > { %535 = vrot.lane.b32.xlu1 %v2606_v34, %s2409_s22  ;;  %582 = vrot.lane.b32.xlu0 %v517_v42, %s2408_s15 }
  0x62   : > { %537 = vrot.lane.b32.xlu2 %v2625_v39, %s2409_s22 }
  0x68   : > { %552 = vrot.lane.b32.xlu1 %v517_v42, %s2410_s18  ;;  %550 = vrot.lane.b32.xlu0 %v2623_v38, %s2410_s18 }
  0x6a   : > { %637 = vrot.lane.b32.xlu2 %v2637_v43, %s2405_s23 }
  0x70   : > { %521 = vrot.lane.b32.xlu1 %v517_v42, %s2411_s16  ;;  %519 = vrot.lane.b32.xlu0 %v2623_v38, %s2411_s16 }
  0x72   : > { %600 = vrot.lane.b32.xlu2 %v2637_v43, %s2404_s19 }
  0x78   : > { %569 = vrot.lane.b32.xlu1 %v2637_v43, %s2407_s13  ;;  %619 = vrot.lane.b32.xlu0 %v518_v53, %s2406_s25 }
  0x7a   : > { %584 = vrot.lane.b32.xlu2 %v518_v53, %s2408_s15 }
  0x80   : > { %554 = vrot.lane.b32.xlu1 %v518_v53, %s2410_s18  ;;  %539 = vrot.lane.b32.xlu0 %v2637_v43, %s2409_s22 }
  0x82   : > { %523 = vrot.lane.b32.xlu2 %v518_v53, %s2411_s16 }
  0x88   : > { %602 = vrot.lane.b32.xlu1 %v2672_v52, %s2404_s19  ;;  %639 = vrot.lane.b32.xlu0 %v2672_v52, %s2405_s23 }
  0x8a   : > { %621 = vrot.lane.b32.xlu2 %v2698_v54, %s2406_s25 }
  0x90   : > { %763 = vrot.lane.b32.xlu1 %v517_v42, %s2405_s23  ;;  %761 = vrot.lane.b32.xlu0 %v2623_v38, %s2405_s23 }
  0x92   : > { %727 = vrot.lane.b32.xlu2 %v2623_v38, %s2404_s19 }
  0x98   : > { %744 = vrot.lane.b32.xlu1 %v2606_v34, %s2406_s25  ;;  %729 = vrot.lane.b32.xlu0 %v517_v42, %s2404_s19 }
  0x9a   : > { %746 = vrot.lane.b32.xlu2 %v2625_v39, %s2406_s25 }
  0xa0   : > { %701 = vrot.lane.b32.xlu1 %v517_v42, %s2407_s13  ;;  %699 = vrot.lane.b32.xlu0 %v2623_v38, %s2407_s13 }
  0xa2   : > { %713 = vrot.lane.b32.xlu2 %v2606_v34, %s2408_s15 }
  0xa4   : > { %v616_v55 = vpop.permute.xlu2 %615 }
  0xa8   : > { %671 = vrot.lane.b32.xlu1 %v2623_v38, %s2409_s22  ;;  %715 = vrot.lane.b32.xlu0 %v2625_v39, %s2408_s15 }
  0xaa   : > { %673 = vrot.lane.b32.xlu2 %v517_v42, %s2409_s22 }
  0xac   : > { %v2726_v56 = vpop.permute.xlu2 %617 }
  0xad   : > { %v624_v57 = vsel %vm623_vm0, %v616_v55, %v2726_v56  ;;  %v843_v55 = vsub.f32 %v2826_v40, %v2837_v51 }
  0xae   : > { %630 = vst [vmem:[#allocation2 + $0x90] sm:$0xf0] %v624_v57 }
  0xb0   : > { %687 = vrot.lane.b32.xlu1 %v2625_v39, %s2410_s18  ;;  %685 = vrot.lane.b32.xlu0 %v2606_v34, %s2410_s18 }
  0xb2   : > { %657 = vrot.lane.b32.xlu2 %v2606_v34, %s2411_s16 }
  0xb4   : > { %v581_v58 = vpop.permute.xlu2 %580 }
  0xb8   : > { %765 = vrot.lane.b32.xlu1 %v518_v53, %s2405_s23  ;;  %659 = vrot.lane.b32.xlu0 %v2625_v39, %s2411_s16 }
  0xba   : > { %v597_v59 = vpop.permute.xlu1 %596  ;;  %v634_v60 = vpop.permute.xlu0 %633  ;;  %731 = vrot.lane.b32.xlu2 %v518_v53, %s2404_s19 }
  0xbc   : > { %v2740_v61 = vpop.permute.xlu2 %537 }
  0xc0   : > { %703 = vrot.lane.b32.xlu1 %v518_v53, %s2407_s13  ;;  %748 = vrot.lane.b32.xlu0 %v2637_v43, %s2406_s25 }
  0xc2   : > { %v599_v62 = vpop.permute.xlu1 %598  ;;  %v636_v63 = vpop.permute.xlu0 %635  ;;  %717 = vrot.lane.b32.xlu2 %v2637_v43, %s2408_s15 }
  0xc3   : > { %v605_v0 = vsel %vm604_vm1, %v597_v59, %v599_v62  ;;  %v642_v1 = vsel %vm641_vm2, %v634_v60, %v636_v63 }
  0xc4   : > { %611 = vst [vmem:[#allocation2 + $0x90] sm:$0xf] %v605_v0  ;;  %v2749_v2 = vpop.permute.xlu2 %637 }
  0xc5   : > { %648 = vst [vmem:[#allocation2 + $0xc0] sm:$0xf] %v642_v1  ;;  %v643_v3 = vsel %vm641_vm2, %v636_v63, %v2749_v2 }
  0xc6   : > { %649 = vst [vmem:[#allocation2 + $0xc8] sm:$0xf] %v643_v3 }
  0xc8   : > { %689 = vrot.lane.b32.xlu1 %v2637_v43, %s2410_s18  ;;  %675 = vrot.lane.b32.xlu0 %v518_v53, %s2409_s22 }
  0xca   : > { %v2758_v4 = vpop.permute.xlu1 %567  ;;  %v566_v5 = vpop.permute.xlu0 %565  ;;  %767 = vrot.lane.b32.xlu2 %v2698_v54, %s2405_s23 }
  0xcb   : > { %v572_v6 = vsel %vm571_vm3, %v566_v5, %v2758_v4  ;;  %v797_v7 = vld [vmem:[#allocation2 + $0x90] sm:$0xff] }
  0xcc   : > { %577 = vst [vmem:[#allocation2 + $0x60] sm:$0xf] %v572_v6  ;;  %v2765_v8 = vpop.permute.xlu2 %600  ;;  %v803_v9 = vld [vmem:[#allocation2 + $0xc0] sm:$0xff]  ;;  %v2767_v10 = vand.u32 4294901760, %v797_v7 }
  0xcd   : > { %v606_v11 = vsel %vm604_vm1, %v599_v62, %v2765_v8  ;;  %v2771_v12 = vand.u32 4294901760, %v803_v9  ;;  %v804_v32 = vld [vmem:[#allocation2 + $0xc8] sm:$0xff] }
  0xce   : > { %612 = vst [vmem:[#allocation2 + $0x98] sm:$0xf] %v606_v11  ;;  %v2774_v13 = vsub.f32 %v797_v7, %v2767_v10  ;;  %v2816_v37 = vand.u32 4294901760, %v804_v32  ;;  %v2858_v7 = vand.u32 4294901760, %v843_v55 }
  0xcf   : > { %831 = vmatpush.msra.mxu0 %v2771_v12  ;;  %939 = vmatpush.msra.mxu3 %v2771_v12  ;;  %v2779_v14 = vsub.f32 %v803_v9, %v2771_v12 }
  0xd0   : > { %733 = vrot.lane.b32.xlu1 %v2698_v54, %s2404_s19  ;;  %661 = vrot.lane.b32.xlu0 %v2637_v43, %s2411_s16  ;;  %v868_v15 = vand.u32 4294901760, %v2774_v13  ;;  %v2829_v43 = vsub.f32 %v804_v32, %v2816_v37 }
  0xd1   : > { %908 = vmatpush.msra.mxu2 %v2779_v14  ;;  %833 = vmatpush.msra.mxu0 %v2767_v10  ;;  %v862_v16 = vand.u32 4294901760, %v2779_v14 }
  0xd2   : > { %941 = vmatpush.msra.mxu3 %v2767_v10  ;;  %v536_v17 = vpop.permute.xlu1 %535  ;;  %v583_v18 = vpop.permute.xlu0 %582  ;;  %750 = vrot.lane.b32.xlu2 %v2672_v52, %s2406_s25  ;;  %v869_v22 = vsub.f32 %v2774_v13, %v868_v15  ;;  %v1060_v53 = vand.u32 4294901760, %v2829_v43 }
  0xd3   : > { %v542_v19 = vsel %vm541_vm5, %v536_v17, %v2740_v61  ;;  %v587_v20 = vsel %vm586_vm6, %v581_v58, %v583_v18  ;;  %911 = vmatpush.msra.mxu2 %v2774_v13  ;;  %v863_v21 = vsub.f32 %v2779_v14, %v862_v16 }
  0xd4   : > { %547 = vst [vmem:[#allocation2 + $0x30] sm:$0xf] %v542_v19  ;;  %v585_v23 = vpop.permute.xlu2 %584  ;;  %v870_v26 = vand.u32 4294901760, %v869_v22  ;;  %v1061_v60 = vsub.f32 %v2829_v43, %v1060_v53 }
  0xd5   : > { %592 = vst [vmem:[#allocation2 + $0x60] sm:$0xf0] %v587_v20  ;;  %v588_v24 = vsel %vm586_vm6, %v583_v18, %v585_v23  ;;  %v864_v25 = vand.u32 4294901760, %v863_v21 }
  0xd6   : > { %593 = vst [vmem:[#allocation2 + $0x68] sm:$0xf0] %v588_v24 }
  0xd7   : > { %594 = vst.msk [vmem:[#allocation2 + $0x70] sm:$0xf0] %vm533_vm7, %v585_v23  ;;  %865 = vmatpush.msra.mxu1 %v864_v25 }
  0xd9   : > { %871 = vmatpush.msra.mxu1 %v870_v26 }
  0xda   : > { %v2807_v28 = vpop.permute.xlu1 %552  ;;  %v551_v29 = vpop.permute.xlu0 %550 }
  0xdb   : > { %v557_v31 = vsel %vm556_vm9, %v551_v29, %v2807_v28 }
  0xdc   : > { %562 = vst [vmem:[#allocation2 + $0x30] sm:$0xf0] %v557_v31  ;;  %v524_v33 = vpop.permute.xlu2 %523  ;;  %v791_v34 = vld [vmem:[#allocation2 + $0x60] sm:$0xff] }
  0xdd   : > { %534 = vst.msk [vmem:[#allocation2 + $0x10] sm:$0xf0] %vm533_vm7, %v524_v33  ;;  %v2812_v35 = vand.u32 4294901760, %v791_v34 }
  0xdf   : > { %835 = vmatpush.msra.mxu0 %v2812_v35  ;;  %943 = vmatpush.msra.mxu3 %v2812_v35  ;;  %v2821_v38 = vsub.f32 %v791_v34, %v2812_v35 }
  0xe1   : > { %914 = vmatpush.msra.mxu2 %v2821_v38  ;;  %v874_v39 = vand.u32 4294901760, %v2821_v38 }
  0xe2   : > { %v522_v41 = vpop.permute.xlu1 %521  ;;  %v520_v42 = vpop.permute.xlu0 %519 }
  0xe3   : > { %v527_v44 = vsel %vm525_vm10, %v522_v41, %v524_v33  ;;  %v526_v45 = vsel %vm525_vm10, %v520_v42, %v522_v41  ;;  %v785_v46 = vld [vmem:[#allocation2 + $0x30] sm:$0xff]  ;;  %v875_v47 = vsub.f32 %v2821_v38, %v874_v39 }
  0xe4   : > { %532 = vst [vmem:[#allocation2 + $0x8] sm:$0xf0] %v527_v44  ;;  %v622_v48 = vpop.permute.xlu2 %621  ;;  %v2834_v49 = vand.u32 4294901760, %v785_v46 }
  0xe5   : > { %531 = vst [vmem:[#allocation2] sm:$0xf0] %v526_v45  ;;  %v876_v50 = vand.u32 4294901760, %v875_v47 }
  0xe6   : > { %837 = vmatpush.msra.mxu0 %v2834_v49  ;;  %945 = vmatpush.msra.mxu3 %v2834_v49  ;;  %v879_v52 = vsub.f32 %v785_v46, %v2834_v49 }
  0xe7   : > { %877 = vmatpush.msra.mxu1 %v876_v50 }
  0xe8   : > { %917 = vmatpush.msra.mxu2 %v879_v52  ;;  %v880_v54 = vand.u32 4294901760, %v879_v52 }
  0xea   : > { %v570_v57 = vpop.permute.xlu1 %569  ;;  %v620_v58 = vpop.permute.xlu0 %619  ;;  %v881_v59 = vsub.f32 %v879_v52, %v880_v54 }
  0xeb   : > { %v573_v62 = vsel %vm571_vm3, %v2758_v4, %v570_v57  ;;  %579 = vst.msk [vmem:[#allocation2 + $0x70] sm:$0xf] %vm511_vm4, %v570_v57  ;;  %v625_v63 = vsel %vm623_vm0, %v2726_v56, %v620_v58  ;;  %v626_v0 = vsel %vm623_vm0, %v620_v58, %v622_v48  ;;  %v1062_v4 = vand.u32 4294901760, %v1061_v60  ;;  %v780_v20 = vld [vmem:[#allocation2 + $0x8] sm:$0xff] }
  0xec   : > { %578 = vst [vmem:[#allocation2 + $0x68] sm:$0xf] %v573_v62  ;;  %v2854_v1 = vpop.permute.xlu2 %727  ;;  %v779_v3 = vld [vmem:[#allocation2] sm:$0xff]  ;;  %v882_v5 = vand.u32 4294901760, %v881_v59  ;;  %v2887_v24 = vand.u32 4294901760, %v780_v20 }
  0xed   : > { %631 = vst [vmem:[#allocation2 + $0x98] sm:$0xf0] %v625_v63  ;;  %v2856_v6 = vand.u32 4294901760, %v779_v3 }
  0xee   : > { %632 = vst.msk [vmem:[#allocation2 + $0xa0] sm:$0xf0] %vm533_vm7, %v626_v0  ;;  %883 = vmatpush.msra.mxu1 %v882_v5  ;;  %v2900_v31 = vsub.f32 %v780_v20, %v2887_v24 }
  0xef   : > { %839 = vmatpush.msra.mxu0 %v2856_v6  ;;  %947 = vmatpush.msra.mxu3 %v2856_v6  ;;  %v885_v56 = vsub.f32 %v779_v3, %v2856_v6 }
  0xf0   : > { %845 = vmatmul.f32.vlgmr.msra.gmra.mxu0 %v2858_v7  ;;  %951 = vmatmul.f32.vlgmr.msra.gmra.mxu3 %v2837_v51 }
  0xf1   : > { %969 = vmatpush.msrb.mxu0 %v862_v16  ;;  %1063 = vmatpush.msrb.mxu3 %v1062_v4  ;;  %v886_v9 = vand.u32 4294901760, %v885_v56 }
  0xf2   : > { %920 = vmatpush.msra.mxu2 %v885_v56  ;;  %v555_v11 = vpop.permute.xlu1 %554  ;;  %v540_v17 = vpop.permute.xlu0 %539  ;;  %v793_v41 = vld [vmem:[#allocation2 + $0x70] sm:$0xff] }
  0xf3   : > { %973 = vmatpush.msrb.mxu0 %v868_v15  ;;  %v558_v18 = vsel %vm556_vm9, %v2807_v28, %v555_v11  ;;  %564 = vst.msk [vmem:[#allocation2 + $0x40] sm:$0xf0] %vm533_vm7, %v555_v11  ;;  %v543_v14 = vsel %vm541_vm5, %v2740_v61, %v540_v17  ;;  %v887_v16 = vsub.f32 %v885_v56, %v886_v9  ;;  %v792_v19 = vld [vmem:[#allocation2 + $0x68] sm:$0xff]  ;;  %v2925_v46 = vand.u32 4294901760, %v793_v41 }
  0xf4   : > { %1029 = vmatpush.msrb.mxu2 %v2816_v37  ;;  %563 = vst [vmem:[#allocation2 + $0x38] sm:$0xf0] %v558_v18  ;;  %v2877_v13 = vpop.permute.xlu2 %746  ;;  %v798_v15 = vld [vmem:[#allocation2 + $0x98] sm:$0xff]  ;;  %v2879_v21 = vand.u32 4294901760, %v792_v19 }
  0xf5   : > { %923 = vmatmul.f32.vlgmr.msra.gmra.mxu2 %v2826_v40  ;;  %977 = vmatpush.msrb.mxu0 %v874_v39  ;;  %548 = vst [vmem:[#allocation2 + $0x38] sm:$0xf] %v543_v14  ;;  %v888_v22 = vand.u32 4294901760, %v887_v16  ;;  %v2881_v23 = vand.u32 4294901760, %v798_v15  ;;  %v2950_v63 = vsub.f32 %v793_v41, %v2925_v46 }
  0xf6   : > { %549 = vst.msk [vmem:[#allocation2 + $0x40] sm:$0xf] %vm511_vm4, %v540_v17  ;;  %v2885_v61 = vsub.f32 %v792_v19, %v2879_v21 }
  0xf7   : > { %981 = vmatpush.msrb.mxu0 %v880_v54  ;;  %889 = vmatpush.msra.mxu1 %v888_v22  ;;  %v1065_v25 = vsub.f32 %v798_v15, %v2881_v23  ;;  %v781_v54 = vld [vmem:[#allocation2 + $0x10] sm:$0xff]  ;;  %v1270_v11 = vand.u32 4294901760, %v2950_v63 }
  0xf8   : > { %1031 = vmatpush.msrb.mxu2 %v2881_v23  ;;  %v1072_v26 = vand.u32 4294901760, %v2885_v61  ;;  %891 = vmatmul.f32.vlgmr.msra.gmra.mxu1 %v2814_v36  ;;  %v2947_v62 = vand.u32 4294901760, %v781_v54 }
  0xf9   : > { %985 = vmatpush.msrb.mxu0 %v886_v9  ;;  %1003 = vmatpush.msrb.mxu1 %v2771_v12  ;;  %v1066_v27 = vand.u32 4294901760, %v1065_v25 }
  0xfa   : > { %1033 = vmatpush.msrb.mxu2 %v2879_v21  ;;  %v603_v28 = vpop.permute.xlu1 %602  ;;  %v640_v29 = vpop.permute.xlu0 %639  ;;  %v1073_v30 = vsub.f32 %v2885_v61, %v1072_v26  ;;  %987 = vmatmul.f32.vlgmr.msrb.gmra.mxu0 %v2814_v36  ;;  %v2964_v17 = vsub.f32 %v781_v54, %v2947_v62 }
  0xfb   : > { %1106 = vmatpush.msra.mxu0 %v2829_v43  ;;  %1005 = vmatpush.msrb.mxu1 %v2767_v10  ;;  %v607_v12 = vsel %vm604_vm1, %v2765_v8, %v603_v28  ;;  %v644_v32 = vsel %vm641_vm2, %v2749_v2, %v640_v29  ;;  %v1067_v33 = vsub.f32 %v1065_v25, %v1066_v27 }
  0xfc   : > { %613 = vst.msk [vmem:[#allocation2 + $0xa0] sm:$0xf] %vm511_vm4, %v607_v12  ;;  %v2910_v10 = vpop.permute.xlu2 %713  ;;  %v786_v34 = vld [vmem:[#allocation2 + $0x38] sm:$0xff]  ;;  %v1074_v2 = vand.u32 4294901760, %v1073_v30 }
  0xfd   : > { %1109 = vmatpush.msra.mxu0 %v1065_v25  ;;  %1007 = vmatpush.msrb.mxu1 %v2812_v35  ;;  %650 = vst.msk [vmem:[#allocation2 + $0xd0] sm:$0xf] %vm511_vm4, %v644_v32  ;;  %v2914_v38 = vand.u32 4294901760, %v786_v34  ;;  %v1068_v8 = vand.u32 4294901760, %v1067_v33  ;;  %v1084_v35 = vand.u32 4294901760, %v2900_v31  ;;  %v787_v47 = vld [vmem:[#allocation2 + $0x40] sm:$0xff] }
  0xfe   : > { %v2941_v59 = vand.u32 4294901760, %v787_v47  ;;  %v1282_v25 = vand.u32 4294901760, %v2964_v17 }
  0xff   : > { %1112 = vmatpush.msra.mxu0 %v2885_v61  ;;  %1009 = vmatpush.msrb.mxu1 %v2834_v49  ;;  %v1077_v39 = vsub.f32 %v786_v34, %v2914_v38  ;;  %v1085_v50 = vsub.f32 %v2900_v31, %v1084_v35 }
 0x100   : > { %1035 = vmatpush.msrb.mxu2 %v2914_v38  ;;  %1069 = vmatpush.msrb.mxu3 %v1068_v8  ;;  %v2958_v4 = vsub.f32 %v787_v47, %v2941_v59 }
 0x101   : > { %1011 = vmatpush.msrb.mxu1 %v2856_v6  ;;  %v1078_v42 = vand.u32 4294901760, %v1077_v39  ;;  %1115 = vmatpush.msra.mxu0 %v1077_v39  ;;  %v1086_v0 = vand.u32 4294901760, %v1085_v50 }
 0x102   : > { %1037 = vmatpush.msrb.mxu2 %v2887_v24  ;;  %1075 = vmatpush.msrb.mxu3 %v1074_v2  ;;  %v2923_v44 = vpop.permute.xlu1 %763  ;;  %v762_v45 = vpop.permute.xlu0 %761  ;;  %v1276_v61 = vand.u32 4294901760, %v2958_v4 }
 0x103   : > { %1137 = vmatpush.msra.mxu1 %v2816_v37  ;;  %v769_v48 = vsel %vm641_vm2, %v762_v45, %v2923_v44  ;;  %v1079_v49 = vsub.f32 %v1077_v39, %v1078_v42  ;;  %v799_v52 = vld [vmem:[#allocation2 + $0xa0] sm:$0xff]  ;;  %1118 = vmatpush.msra.mxu0 %v2900_v31  ;;  %v1283_v31 = vsub.f32 %v2964_v17, %v1282_v25 }
 0x104   : > { %1167 = vmatpush.msra.mxu2 %v1060_v53  ;;  %1013 = vmatmul.f32.vlgmr.msrb.gmra.mxu1 %v2814_v36  ;;  %775 = vst [vmem:[#allocation2 + $0xd8] sm:$0xf] %v769_v48  ;;  %v2935_v55 = vpop.permute.xlu2 %673  ;;  %v805_v57 = vld [vmem:[#allocation2 + $0xd0] sm:$0xff]  ;;  %v2937_v43 = vand.u32 4294901760, %v799_v52 }
 0x105   : > { %1139 = vmatpush.msra.mxu1 %v2881_v23  ;;  %v1080_v53 = vand.u32 4294901760, %v1079_v49  ;;  %v2939_v58 = vand.u32 4294901760, %v805_v57  ;;  %1121 = vmatmul.f32.vlgmr.msra.gmra.mxu0 %v2826_v40  ;;  %v1284_v8 = vand.u32 4294901760, %v1283_v31 }
 0x106   : > { %1171 = vmatpush.msra.mxu2 %v1066_v27  ;;  %v1263_v60 = vsub.f32 %v799_v52, %v2937_v43 }
 0x107   : > { %1141 = vmatpush.msra.mxu1 %v2879_v21  ;;  %1043 = vmatmul.f32.vlgmr.msrb.gmra.mxu2 %v2858_v7  ;;  %v1257_v3 = vsub.f32 %v805_v57, %v2939_v58 }
 0x108   : > { %1175 = vmatpush.msra.mxu2 %v1072_v26  ;;  %1081 = vmatpush.msrb.mxu3 %v1080_v53  ;;  %v1264_v5 = vand.u32 4294901760, %v1263_v60  ;;  %v1277_v26 = vsub.f32 %v2958_v4, %v1276_v61 }
 0x109   : > { %1143 = vmatpush.msra.mxu1 %v2914_v38  ;;  %1227 = vmatpush.msrb.mxu0 %v2939_v58  ;;  %v1258_v6 = vand.u32 4294901760, %v1257_v3 }
 0x10a   : > { %1179 = vmatpush.msra.mxu2 %v1078_v42  ;;  %1087 = vmatpush.msrb.mxu3 %v1086_v0  ;;  %v745_v56 = vpop.permute.xlu1 %744  ;;  %v730_v9 = vpop.permute.xlu0 %729  ;;  %v1265_v15 = vsub.f32 %v1263_v60, %v1264_v5  ;;  %v1278_v33 = vand.u32 4294901760, %v1277_v26 }
 0x10b   : > { %1145 = vmatpush.msra.mxu1 %v2887_v24  ;;  %1229 = vmatpush.msrb.mxu0 %v2937_v43  ;;  %v752_v18 = vsel %vm623_vm0, %v745_v56, %v2877_v13  ;;  %v735_v14 = vsel %vm604_vm1, %v2854_v1, %v730_v9  ;;  %v1259_v16 = vsub.f32 %v1257_v3, %v1258_v6  ;;  %v806_v19 = vld [vmem:[#allocation2 + $0xd8] sm:$0xff] }
 0x10c   : > { %1183 = vmatpush.msra.mxu2 %v1084_v35  ;;  %1201 = vmatpush.msra.mxu3 %v2816_v37  ;;  %758 = vst [vmem:[#allocation2 + $0xa8] sm:$0xf0] %v752_v18  ;;  %v2972_v20 = vpop.permute.xlu2 %657  ;;  %v2975_v37 = vand.u32 4294901760, %v806_v19  ;;  %v1271_v1 = vsub.f32 %v2950_v63, %v1270_v11 }
 0x10d   : > { %1231 = vmatpush.msrb.mxu0 %v2925_v46  ;;  %741 = vst [vmem:[#allocation2 + $0xa8] sm:$0xf] %v735_v14  ;;  %v1260_v22 = vand.u32 4294901760, %v1259_v16  ;;  %1149 = vmatmul.f32.vlgmr.msra.gmra.mxu1 %v2837_v51 }
 0x10e   : > { %1304 = vmatpush.msrb.mxu2 %v1257_v3  ;;  %1203 = vmatpush.msra.mxu3 %v2881_v23  ;;  %v1266_v23 = vand.u32 4294901760, %v1265_v15  ;;  %v2988_v27 = vsub.f32 %v806_v19, %v2975_v37  ;;  %v1272_v29 = vand.u32 4294901760, %v1271_v1 }
 0x10f   : > { %1233 = vmatpush.msrb.mxu0 %v2941_v59  ;;  %1261 = vmatpush.msrb.mxu1 %v1260_v22 }
 0x110   : > { %1307 = vmatpush.msrb.mxu2 %v1263_v60  ;;  %1205 = vmatpush.msra.mxu3 %v2879_v21 }
 0x111   : > { %1235 = vmatpush.msrb.mxu0 %v2947_v62  ;;  %1267 = vmatpush.msrb.mxu1 %v1266_v23 }
 0x112   : > { %1310 = vmatpush.msrb.mxu2 %v2950_v63  ;;  %1207 = vmatpush.msra.mxu3 %v2914_v38  ;;  %v2991_v21 = vpop.permute.xlu1 %701  ;;  %v700_v28 = vpop.permute.xlu0 %699  ;;  %v1456_v38 = vand.u32 4294901760, %v2988_v27 }
 0x113   : > { %1365 = vmatpush.msra.mxu0 %v1258_v6  ;;  %v705_v30 = vsel %vm571_vm3, %v700_v28, %v2991_v21  ;;  %1089 = vmatmul.f32.vlgmr.msrb.gmra.mxu3 %v2814_v36 }
 0x114   : > { %1313 = vmatpush.msrb.mxu2 %v2958_v4  ;;  %1209 = vmatpush.msra.mxu3 %v2887_v24  ;;  %710 = vst [vmem:[#allocation2 + $0x78] sm:$0xf] %v705_v30  ;;  %v2998_v12 = vpop.permute.xlu2 %731  ;;  %v800_v32 = vld [vmem:[#allocation2 + $0xa8] sm:$0xff]  ;;  %v1457_v39 = vsub.f32 %v2988_v27, %v1456_v38 }
 0x115   : > { %1369 = vmatpush.msra.mxu0 %v1264_v5  ;;  %1273 = vmatpush.msrb.mxu1 %v1272_v29  ;;  %v736_v24 = vsel %vm604_vm1, %v730_v9, %v2998_v12  ;;  %v3004_v34 = vand.u32 4294901760, %v800_v32 }
 0x116   : > { %1316 = vmatpush.msrb.mxu2 %v2964_v17  ;;  %1335 = vmatpush.msrb.mxu3 %v2939_v58  ;;  %742 = vst [vmem:[#allocation2 + $0xb0] sm:$0xf] %v736_v24  ;;  %v1458_v50 = vand.u32 4294901760, %v1457_v39 }
 0x117   : > { %1185 = vmatmul.f32.vlgmr.msra.gmra.mxu2 %v2814_v36  ;;  %1373 = vmatpush.msra.mxu0 %v1270_v11  ;;  %v3010_v2 = vsub.f32 %v800_v32, %v3004_v34 }
 0x118   : > { %1425 = vmatpush.msra.mxu2 %v2975_v37  ;;  %1279 = vmatpush.msrb.mxu1 %v1278_v33 }
 0x119   : > { %1337 = vmatpush.msrb.mxu3 %v2937_v43  ;;  %1377 = vmatpush.msra.mxu0 %v1276_v61  ;;  %v1462_v35 = vand.u32 4294901760, %v3010_v2 }
 0x11a   : > { %1285 = vmatpush.msrb.mxu1 %v1284_v8  ;;  %1427 = vmatpush.msra.mxu2 %v3004_v34  ;;  %v672_v41 = vpop.permute.xlu1 %671  ;;  %v716_v42 = vpop.permute.xlu0 %715 }
 0x11b   : > { %1339 = vmatpush.msrb.mxu3 %v2925_v46  ;;  %1381 = vmatpush.msra.mxu0 %v1282_v25  ;;  %v677_v45 = vsel %vm541_vm5, %v672_v41, %v2935_v55  ;;  %v719_v47 = vsel %vm586_vm6, %v2910_v10, %v716_v42  ;;  %v1463_v48 = vsub.f32 %v3010_v2, %v1462_v35 }
 0x11c   : > { %1399 = vmatpush.msra.mxu1 %v2939_v58  ;;  %1241 = vmatmul.f32.vlgmr.msrb.gmra.mxu0 %v2858_v7  ;;  %682 = vst [vmem:[#allocation2 + $0x48] sm:$0xf] %v677_v45  ;;  %v718_v49 = vpop.permute.xlu2 %717 }
 0x11d   : > { %1341 = vmatpush.msrb.mxu3 %v2941_v59  ;;  %1502 = vmatpush.msrb.mxu0 %v2988_v27  ;;  %724 = vst [vmem:[#allocation2 + $0x78] sm:$0xf0] %v719_v47  ;;  %v720_v52 = vsel %vm586_vm6, %v716_v42, %v718_v49  ;;  %v1464_v54 = vand.u32 4294901760, %v1463_v48 }
 0x11e   : > { %1401 = vmatpush.msra.mxu1 %v2937_v43  ;;  %1211 = vmatmul.f32.vlgmr.msra.gmra.mxu3 %v2814_v36  ;;  %725 = vst [vmem:[#allocation2 + $0x80] sm:$0xf0] %v720_v52 }
 0x11f   : > { %1343 = vmatpush.msrb.mxu3 %v2947_v62  ;;  %1505 = vmatpush.msrb.mxu0 %v3010_v2  ;;  %726 = vst.msk [vmem:[#allocation2 + $0x88] sm:$0xf0] %vm533_vm7, %v718_v49 }
 0x120   : > { %1403 = vmatpush.msra.mxu1 %v2925_v46  ;;  %1319 = vmatmul.f32.vlgmr.msrb.gmra.mxu2 %v2826_v40 }
 0x121   : > { %1459 = vmatpush.msra.mxu3 %v1458_v50  ;;  %1287 = vmatmul.f32.vlgmr.msrb.gmra.mxu1 %v2814_v36 }
 0x122   : > { %1405 = vmatpush.msra.mxu1 %v2941_v59  ;;  %v3040_v10 = vpop.permute.xlu1 %687  ;;  %v686_v57 = vpop.permute.xlu0 %685 }
 0x123   : > { %1465 = vmatpush.msra.mxu3 %v1464_v54  ;;  %v691_v43 = vsel %vm556_vm9, %v686_v57, %v3040_v10 }
 0x124   : > { %1407 = vmatpush.msra.mxu1 %v2947_v62  ;;  %1383 = vmatmul.f32.vlgmr.msra.gmra.mxu0 %v2814_v36  ;;  %696 = vst [vmem:[#allocation2 + $0x48] sm:$0xf0] %v691_v43  ;;  %v794_v46 = vld [vmem:[#allocation2 + $0x78] sm:$0xff]  ;;  %v768_v58 = vpop.permute.xlu2 %767 }
 0x125   : > { %v3047_v53 = vand.u32 4294901760, %v794_v46 }
 0x126   : > { %1533 = vmatpush.msrb.mxu1 %v2975_v37  ;;  %1347 = vmatmul.f32.vlgmr.msrb.gmra.mxu3 %v2837_v51 }
 0x127   : > { %1429 = vmatpush.msra.mxu2 %v3047_v53  ;;  %v1467_v59 = vsub.f32 %v794_v46, %v3047_v53 }
 0x128   : > { %1535 = vmatpush.msrb.mxu1 %v3004_v34 }
 0x129   : > { %1508 = vmatpush.msrb.mxu0 %v1467_v59  ;;  %v1468_v60 = vand.u32 4294901760, %v1467_v59  ;;  %1409 = vmatmul.f32.vlgmr.msra.gmra.mxu1 %v2814_v36 }
 0x12a   : > { %1537 = vmatpush.msrb.mxu1 %v3047_v53  ;;  %v766_v62 = vpop.permute.xlu1 %765  ;;  %v3055_v63 = vpop.permute.xlu0 %659 }
 0x12b   : > { %v770_v0 = vsel %vm641_vm2, %v2923_v44, %v766_v62  ;;  %v663_v3 = vsel %vm525_vm10, %v2972_v20, %v3055_v63  ;;  %v771_v5 = vsel %vm641_vm2, %v766_v62, %v768_v58  ;;  %v788_v6 = vld [vmem:[#allocation2 + $0x48] sm:$0xff]  ;;  %v1469_v4 = vsub.f32 %v1467_v59, %v1468_v60 }
 0x12c   : > { %776 = vst [vmem:[#allocation2 + $0xe0] sm:$0xf] %v770_v0  ;;  %v3063_v56 = vand.u32 4294901760, %v788_v6  ;;  %v751_v11 = vpop.permute.xlu2 %750 }
 0x12d   : > { %668 = vst [vmem:[#allocation2 + $0x18] sm:$0xf0] %v663_v3  ;;  %v1470_v9 = vand.u32 4294901760, %v1469_v4 }
 0x12e   : > { %777 = vst.msk [vmem:[#allocation2 + $0xe8] sm:$0xf] %vm511_vm4, %v771_v5  ;;  %1431 = vmatpush.msra.mxu2 %v3063_v56  ;;  %1539 = vmatpush.msrb.mxu1 %v3063_v56  ;;  %v1473_v44 = vsub.f32 %v788_v6, %v3063_v56 }
 0x12f   : > { %1471 = vmatpush.msra.mxu3 %v1470_v9 }
 0x130   : > { %1511 = vmatpush.msrb.mxu0 %v1473_v44  ;;  %v1474_v17 = vand.u32 4294901760, %v1473_v44 }
 0x132   : > { %v704_v18 = vpop.permute.xlu1 %703  ;;  %v749_v14 = vpop.permute.xlu0 %748  ;;  %v1475_v16 = vsub.f32 %v1473_v44, %v1474_v17 }
 0x133   : > { %v706_v19 = vsel %vm571_vm3, %v2991_v21, %v704_v18  ;;  %712 = vst.msk [vmem:[#allocation2 + $0x88] sm:$0xf] %vm511_vm4, %v704_v18  ;;  %v753_v20 = vsel %vm623_vm0, %v2877_v13, %v749_v14  ;;  %v754_v15 = vsel %vm623_vm0, %v749_v14, %v751_v11  ;;  %v807_v22 = vld [vmem:[#allocation2 + $0xe0] sm:$0xff] }
 0x134   : > { %711 = vst [vmem:[#allocation2 + $0x80] sm:$0xf] %v706_v19  ;;  %v782_v61 = vld [vmem:[#allocation2 + $0x18] sm:$0xff]  ;;  %v1476_v1 = vand.u32 4294901760, %v1475_v16  ;;  %v3075_v25 = vand.u32 4294901760, %v807_v22 }
 0x135   : > { %759 = vst [vmem:[#allocation2 + $0xb0] sm:$0xf0] %v753_v20  ;;  %v3077_v23 = vand.u32 4294901760, %v782_v61  ;;  %v808_v41 = vld [vmem:[#allocation2 + $0xe8] sm:$0xff] }
 0x136   : > { %760 = vst.msk [vmem:[#allocation2 + $0xb8] sm:$0xf0] %vm533_vm7, %v754_v15  ;;  %1477 = vmatpush.msra.mxu3 %v1476_v1  ;;  %v3081_v26 = vsub.f32 %v807_v22, %v3075_v25  ;;  %v3120_v48 = vand.u32 4294901760, %v808_v41 }
 0x137   : > { %1433 = vmatpush.msra.mxu2 %v3077_v23  ;;  %1541 = vmatpush.msrb.mxu1 %v3077_v23  ;;  %v1479_v13 = vsub.f32 %v782_v61, %v3077_v23 }
 0x138   : > { %v1654_v21 = vand.u32 4294901760, %v3081_v26  ;;  %1545 = vmatmul.f32.vlgmr.msrb.gmra.mxu1 %v2837_v51  ;;  %1439 = vmatmul.f32.vlgmr.msra.gmra.mxu2 %v2858_v7  ;;  %v3142_v43 = vsub.f32 %v808_v41, %v3120_v48 }
 0x139   : > { %1563 = vmatpush.msrb.mxu2 %v1456_v38  ;;  %1514 = vmatpush.msrb.mxu0 %v1479_v13  ;;  %v1480_v28 = vand.u32 4294901760, %v1479_v13 }
 0x13a   : > { %v690_v29 = vpop.permute.xlu1 %689  ;;  %v676_v30 = vpop.permute.xlu0 %675  ;;  %v1655_v27 = vsub.f32 %v3081_v26, %v1654_v21  ;;  %1517 = vmatmul.f32.vlgmr.msrb.gmra.mxu0 %v2826_v40  ;;  %v796_v46 = vld [vmem:[#allocation2 + $0x88] sm:$0xff] }
 0x13b   : > { %1567 = vmatpush.msrb.mxu2 %v1462_v35  ;;  %1623 = vmatpush.msra.mxu0 %v3075_v25  ;;  %v692_v31 = vsel %vm556_vm9, %v3040_v10, %v690_v29  ;;  %698 = vst.msk [vmem:[#allocation2 + $0x58] sm:$0xf0] %vm533_vm7, %v690_v29  ;;  %v678_v32 = vsel %vm541_vm5, %v2935_v55, %v676_v30  ;;  %v795_v33 = vld [vmem:[#allocation2 + $0x80] sm:$0xff] }
 0x13c   : > { %v1481_v24 = vsub.f32 %v1479_v13, %v1480_v28  ;;  %697 = vst [vmem:[#allocation2 + $0x50] sm:$0xf0] %v692_v31  ;;  %v801_v38 = vld [vmem:[#allocation2 + $0xb0] sm:$0xff]  ;;  %v1656_v8 = vand.u32 4294901760, %v1655_v27  ;;  %v3103_v2 = vand.u32 4294901760, %v795_v33 }
 0x13d   : > { %1571 = vmatpush.msrb.mxu2 %v1468_v60  ;;  %683 = vst [vmem:[#allocation2 + $0x50] sm:$0xf] %v678_v32  ;;  %v3105_v35 = vand.u32 4294901760, %v801_v38  ;;  %v3149_v60 = vand.u32 4294901760, %v796_v46 }
 0x13e   : > { %v1482_v39 = vand.u32 4294901760, %v1481_v24  ;;  %684 = vst.msk [vmem:[#allocation2 + $0x58] sm:$0xf] %vm511_vm4, %v676_v30  ;;  %1657 = vmatpush.msra.mxu1 %v1656_v8  ;;  %v3109_v55 = vsub.f32 %v795_v33, %v3103_v2 }
 0x13f   : > { %1575 = vmatpush.msrb.mxu2 %v1474_v17  ;;  %1625 = vmatpush.msra.mxu0 %v3105_v35  ;;  %v3113_v42 = vsub.f32 %v801_v38, %v3105_v35  ;;  %v3160_v9 = vsub.f32 %v796_v46, %v3149_v60 }
 0x140   : > { %1483 = vmatpush.msra.mxu3 %v1482_v39  ;;  %v1666_v45 = vand.u32 4294901760, %v3109_v55 }
 0x141   : > { %1579 = vmatpush.msrb.mxu2 %v1480_v28  ;;  %1485 = vmatmul.f32.vlgmr.msra.gmra.mxu3 %v2814_v36  ;;  %v1660_v47 = vand.u32 4294901760, %v3113_v42  ;;  %v1864_v15 = vand.u32 4294901760, %v3160_v9 }
 0x142   : > { %1597 = vmatpush.msrb.mxu3 %v2975_v37  ;;  %1627 = vmatpush.msra.mxu0 %v3103_v2  ;;  %v734_v49 = vpop.permute.xlu1 %733  ;;  %v662_v50 = vpop.permute.xlu0 %661  ;;  %v1667_v37 = vsub.f32 %v3109_v55, %v1666_v45 }
 0x143   : > { %1700 = vmatpush.msra.mxu2 %v3081_v26  ;;  %v737_v52 = vsel %vm604_vm1, %v2998_v12, %v734_v49  ;;  %v664_v54 = vsel %vm525_vm10, %v3055_v63, %v662_v50  ;;  %670 = vst.msk [vmem:[#allocation2 + $0x28] sm:$0xf0] %vm533_vm7, %v662_v50  ;;  %v1852_v63 = vand.u32 4294901760, %v3142_v43  ;;  %v1865_v28 = vsub.f32 %v3160_v9, %v1864_v15 }
 0x144   : > { %1599 = vmatpush.msrb.mxu3 %v3004_v34  ;;  %1581 = vmatmul.f32.vlgmr.msrb.gmra.mxu2 %v2814_v36  ;;  %v1661_v34 = vsub.f32 %v3113_v42, %v1660_v47  ;;  %743 = vst.msk [vmem:[#allocation2 + $0xb8] sm:$0xf] %vm511_vm4, %v737_v52  ;;  %v789_v10 = vld [vmem:[#allocation2 + $0x50] sm:$0xff]  ;;  %v1668_v58 = vand.u32 4294901760, %v1667_v37  ;;  %v2412_v50 = vmov 0.0  }
 0x145   : > { %1703 = vmatpush.msra.mxu2 %v3113_v42  ;;  %669 = vst [vmem:[#allocation2 + $0x20] sm:$0xf0] %v664_v54  ;;  %v3139_v12 = vand.u32 4294901760, %v789_v10  ;;  %v1853_v18 = vsub.f32 %v3142_v43, %v1852_v63  ;;  %v1866_v31 = vand.u32 4294901760, %v1865_v28 }
 0x146   : > { %1601 = vmatpush.msrb.mxu3 %v3047_v53  ;;  %v1662_v57 = vand.u32 4294901760, %v1661_v34  ;;  %v790_v53 = vld [vmem:[#allocation2 + $0x58] sm:$0xff] }
 0x147   : > { %1706 = vmatpush.msra.mxu2 %v3109_v55  ;;  %1629 = vmatpush.msra.mxu0 %v3139_v12  ;;  %v1671_v59 = vsub.f32 %v789_v10, %v3139_v12  ;;  %v3154_v0 = vand.u32 4294901760, %v790_v53  ;;  %v1854_v61 = vand.u32 4294901760, %v1853_v18 }
 0x148   : > { %1603 = vmatpush.msrb.mxu3 %v3063_v56  ;;  %1663 = vmatpush.msra.mxu1 %v1662_v57  ;;  %v810_v57 = vld [vmem:[%s3306_s4 + $0x8] sm:$0xff] }
 0x149   : > { %v1672_v62 = vand.u32 4294901760, %v1671_v59  ;;  %1709 = vmatpush.msra.mxu2 %v1671_v59  ;;  %v3170_v16 = vsub.f32 %v790_v53, %v3154_v0 }
 0x14a   : > { %1605 = vmatpush.msrb.mxu3 %v3077_v23  ;;  %1669 = vmatpush.msra.mxu1 %v1668_v58  ;;  %v784_v3 = vld [vmem:[#allocation2 + $0x28] sm:$0xff] }
 0x14b   : > { %1607 = vmatmul.f32.vlgmr.msrb.gmra.mxu3 %v2814_v36  ;;  %v1673_v5 = vsub.f32 %v1671_v59, %v1672_v62  ;;  %v802_v6 = vld [vmem:[#allocation2 + $0xb8] sm:$0xff]  ;;  %v3162_v44 = vand.u32 4294901760, %v784_v3  ;;  %v1870_v13 = vand.u32 4294901760, %v3170_v16 }
 0x14c   : > { %1731 = vmatpush.msra.mxu3 %v3075_v25  ;;  %v783_v4 = vld [vmem:[#allocation2 + $0x20] sm:$0xff]  ;;  %v3157_v56 = vand.u32 4294901760, %v802_v6 }
 0x14d   : > { %v1630_v11 = vand.u32 4294901760, %v783_v4  ;;  %v1674_v17 = vand.u32 4294901760, %v1673_v5  ;;  %v1875_v22 = vsub.f32 %v784_v3, %v3162_v44  ;;  %v1871_v27 = vsub.f32 %v3170_v16, %v1870_v13 }
 0x14e   : > { %1733 = vmatpush.msra.mxu3 %v3105_v35  ;;  %v1857_v14 = vsub.f32 %v802_v6, %v3157_v56  ;;  %v811_v6 = vld [vmem:[%s3306_s4 + $0x10] sm:$0xff] }
 0x14f   : > { %1631 = vmatpush.msra.mxu0 %v1630_v11  ;;  %1675 = vmatpush.msra.mxu1 %v1674_v17  ;;  %v1677_v19 = vsub.f32 %v783_v4, %v1630_v11  ;;  %v1876_v29 = vand.u32 4294901760, %v1875_v22  ;;  %v1872_v24 = vand.u32 4294901760, %v1871_v27 }
 0x150   : > { %1735 = vmatpush.msra.mxu3 %v3103_v2  ;;  %v1858_v20 = vand.u32 4294901760, %v1857_v14  ;;  %1637 = vmatmul.f32.vlgmr.msra.gmra.mxu0 %v2858_v7 }
 0x151   : > { %1761 = vmatpush.msrb.mxu0 %v1654_v21  ;;  %1712 = vmatpush.msra.mxu2 %v1677_v19  ;;  %v1678_v1 = vand.u32 4294901760, %v1677_v19  ;;  %v1877_v32 = vsub.f32 %v1875_v22, %v1876_v29 }
 0x152   : > { %1737 = vmatpush.msra.mxu3 %v3139_v12  ;;  %v1859_v23 = vsub.f32 %v1857_v14, %v1858_v20  ;;  %1715 = vmatmul.f32.vlgmr.msra.gmra.mxu2 %v2826_v40 }
 0x153   : > { %1765 = vmatpush.msrb.mxu0 %v1660_v47  ;;  %1821 = vmatpush.msrb.mxu2 %v3120_v48  ;;  %v1679_v26 = vsub.f32 %v1677_v19, %v1678_v1  ;;  %v1878_v33 = vand.u32 4294901760, %v1877_v32 }
 0x154   : > { %1739 = vmatpush.msra.mxu3 %v1630_v11  ;;  %v1860_v21 = vand.u32 4294901760, %v1859_v23 }
 0x155   : > { %1769 = vmatpush.msrb.mxu0 %v1666_v45  ;;  %1823 = vmatpush.msrb.mxu2 %v3157_v56  ;;  %v1680_v30 = vand.u32 4294901760, %v1679_v26 }
 0x156   : > { %1855 = vmatpush.msrb.mxu3 %v1854_v61 }
 0x157   : > { %1743 = vmatmul.f32.vlgmr.msra.gmra.mxu3 %v2837_v51  ;;  %1773 = vmatpush.msrb.mxu0 %v1672_v62 }
 0x158   : > { %1861 = vmatpush.msrb.mxu3 %v1860_v21  ;;  %1825 = vmatpush.msrb.mxu2 %v3149_v60 }
 0x159   : > { %1681 = vmatpush.msra.mxu1 %v1680_v30  ;;  %1777 = vmatpush.msrb.mxu0 %v1678_v1 }
 0x15a   : > { %1827 = vmatpush.msrb.mxu2 %v3154_v0  ;;  %1683 = vmatmul.f32.vlgmr.msra.gmra.mxu1 %v2814_v36 }
 0x15b   : > { %1795 = vmatpush.msrb.mxu1 %v3075_v25  ;;  %1867 = vmatpush.msrb.mxu3 %v1866_v31  ;;  %v2009_v31 = vld [vmem:[%s3313_s11 + $0x10] sm:$0xff] }
 0x15c   : > { %1898 = vmatpush.msra.mxu0 %v3142_v43  ;;  %1829 = vmatpush.msrb.mxu2 %v3162_v44 }
 0x15d   : > { %1797 = vmatpush.msrb.mxu1 %v3105_v35  ;;  %1873 = vmatpush.msrb.mxu3 %v1872_v24 }
 0x15e   : > { %1901 = vmatpush.msra.mxu0 %v1857_v14  ;;  %1959 = vmatpush.msra.mxu2 %v1852_v63 }
 0x15f   : > { %1799 = vmatpush.msrb.mxu1 %v3103_v2  ;;  %1879 = vmatpush.msrb.mxu3 %v1878_v33 }
 0x160   : > { %1904 = vmatpush.msra.mxu0 %v3160_v9  ;;  %1963 = vmatpush.msra.mxu2 %v1858_v20 }
 0x161   : > { %1801 = vmatpush.msrb.mxu1 %v3139_v12  ;;  %1835 = vmatmul.f32.vlgmr.msrb.gmra.mxu2 %v2858_v7  ;;  %v809_v7 = vld [vmem:[%s3306_s4] sm:$0xff] }
 0x162   : > { %1993 = vmatpush.msra.mxu3 %v3120_v48  ;;  %1779 = vmatmul.f32.vlgmr.msrb.gmra.mxu0 %v2814_v36 }
 0x163   : > { %1967 = vmatpush.msra.mxu2 %v1864_v15  ;;  %1907 = vmatpush.msra.mxu0 %v3170_v16 }
 0x164   : > { %1803 = vmatpush.msrb.mxu1 %v1630_v11  ;;  %1881 = vmatmul.f32.vlgmr.msrb.gmra.mxu3 %v2814_v36  ;;  %v2008_v11 = vld [vmem:[%s3313_s11 + $0x8] sm:$0xff] }
 0x165   : > { %1805 = vmatmul.f32.vlgmr.msrb.gmra.mxu1 %v2814_v36  ;;  %1995 = vmatpush.msra.mxu3 %v3157_v56  ;;  %v2014_v20 = vmul.f32 0.65, %v2008_v11 }
 0x166   : > { %1910 = vmatpush.msra.mxu0 %v1875_v22  ;;  %1929 = vmatpush.msra.mxu1 %v3120_v48 }
 0x167   : > { %1971 = vmatpush.msra.mxu2 %v1870_v13  ;;  %1997 = vmatpush.msra.mxu3 %v3149_v60 }
 0x168   : > { %1931 = vmatpush.msra.mxu1 %v3157_v56 }
 0x169   : > { %1975 = vmatpush.msra.mxu2 %v1876_v29  ;;  %1999 = vmatpush.msra.mxu3 %v3154_v0 }
 0x16a   : > { %1977 = vmatmul.f32.vlgmr.msra.gmra.mxu2 %v2814_v36  ;;  %1933 = vmatpush.msra.mxu1 %v3149_v60 }
 0x16b   : > { %1913 = vmatmul.f32.vlgmr.msra.gmra.mxu0 %v2826_v40  ;;  %2001 = vmatpush.msra.mxu3 %v3162_v44 }
 0x16c   : > { %1935 = vmatpush.msra.mxu1 %v3154_v0  ;;  %2003 = vmatmul.f32.vlgmr.msra.gmra.mxu3 %v2814_v36  ;;  %v2007_v36 = vld [vmem:[%s3313_s11] sm:$0xff] }
 0x16d   : > { %v846_v25 = vpop.f32.mrf.mxu0  ;;  %v2013_v42 = vmul.f32 0.65, %v2007_v36 }
 0x16e   : > { %1937 = vmatpush.msra.mxu1 %v3162_v44  ;;  %v847_v38 = vadd.f32 %v846_v25, %v809_v7  ;;  %v2015_v7 = vmul.f32 0.65, %v2009_v31 }
 0x16f   : > { %1941 = vmatmul.f32.vlgmr.msra.gmra.mxu1 %v2837_v51 }
 0x173   : > { %v952_v39 = vpop.f32.mrf.mxu3 }
 0x175   : > { %v892_v8 = vpop.f32.mrf.mxu1 }
 0x176   : > { %v893_v40 = vadd.f32 %v892_v8, %v847_v38 }
 0x177   : > { %v988_v55 = vpop.f32.mrf.mxu0 }
 0x178   : > { %v924_v2 = vpop.f32.mrf.mxu2 }
 0x179   : > { %v925_v35 = vadd.f32 %v924_v2, %v893_v40 }
 0x17b   : > { %v953_v41 = vadd.f32 %v952_v39, %v925_v35 }
 0x17d   : > { %v989_v51 = vadd.f32 %v988_v55, %v953_v41 }
 0x181   : > { %v1014_v45 = vpop.f32.mrf.mxu1 }
 0x182   : > { %v1015_v47 = vadd.f32 %v1014_v45, %v989_v51  ;;  %v1122_v12 = vpop.f32.mrf.mxu0 }
 0x184   : > { %v2019_v48 = vadd.f32 %v2013_v42, %v1015_v47 }
 0x186   : > { %vm2025_vm11 = vcmp.gt.f32.partialorder %v2019_v48, 0.0  ;;  %v2343_v49 = vmul.f32 -1.442695, %v2019_v48  ;;  %2169 = vst [vmem:[%s2499_s14] sm:$0xff] %v2019_v48 }
 0x187   : > { %v2337_v37 = vsel %vm2025_vm11, 1.0, %v2412_v50 }
 0x188   : > { %2043 = vst [vmem:[%s2489_s27] sm:$0xff] %v2337_v37  ;;  %2371 = vpow2.f32 %v2343_v49  ;;  %v2175_v52 = vsub.f32 %v2013_v42, %v2337_v37 }
 0x18a   : > { %2181 = vst [vmem:[%s3313_s11] sm:$0xff] %v2175_v52  ;;  %v1044_v10 = vpop.f32.mrf.mxu2  ;;  %v1150_v46 = vpop.f32.mrf.mxu1  ;;  %v812_v52 = vld [vmem:[%s3306_s4 + $0x18] sm:$0xff] }
 0x18b   : > { %v1045_v43 = vadd.f32 %v1044_v10, %v810_v57 }
 0x18e   : > { %v2372_v54 = vpop.eup %2371 }
 0x18f   : > { %v2067_v34 = vadd.f32 1.0, %v2372_v54 }
 0x191   : > { %2373 = vrcp.f32 %v2067_v34  ;;  %v2084_v60 = vand.u32 2147483648, %v2067_v34  ;;  %vm2078_vm12 = vweird.f32 %v2067_v34  ;;  %v2082_v0 = vand.u32 2147483647, %v2067_v34 }
 0x193   : > { %v2085_v9 = vor.u32 1.1754944e-38, %v2084_v60  ;;  %vm2083_vm15 = vcmp.eq.f32.partialorder %v2082_v0, 8.507059e+37 }
 0x196   : > { %v1090_v53 = vpop.f32.mrf.mxu3 }
 0x197   : > { %v2374_v58 = vpop.eup %2373  ;;  %v1091_v62 = vadd.f32 %v1090_v53, %v1045_v43 }
 0x198   : > { %v2074_v59 = vmul.f32 %v2374_v58, %v2067_v34  ;;  %vm2079_vm13 = vweird.f32 %v2374_v58 }
 0x199   : > { %v1123_v5 = vadd.f32 %v1122_v12, %v1091_v62  ;;  %v1242_v4 = vpop.f32.mrf.mxu0  ;;  %vm2080_vm14 = vmor %vm2078_vm12, %vm2079_vm13 }
 0x19a   : > { %v2075_v63 = vsub.f32 1.0, %v2074_v59  ;;  %v1186_v3 = vpop.f32.mrf.mxu2  ;;  %v1243_v18 = vadd.f32 %v1242_v4, %v811_v6  ;;  %v2010_v4 = vld [vmem:[%s3313_s11 + $0x18] sm:$0xff] }
 0x19b   : > { %v1151_v44 = vadd.f32 %v1150_v46, %v1123_v5 }
 0x19c   : > { %v2076_v56 = vmul.f32 %v2374_v58, %v2075_v63 }
 0x19d   : > { %v1187_v14 = vadd.f32 %v1186_v3, %v1151_v44 }
 0x19e   : > { %v2077_v17 = vadd.f32 %v2374_v58, %v2076_v56  ;;  %v1288_v16 = vpop.f32.mrf.mxu1 }
 0x19f   : > { %v1289_v1 = vadd.f32 %v1288_v16, %v1243_v18 }
 0x1a0   : > { %v2081_v19 = vsel %vm2080_vm14, %v2374_v58, %v2077_v17  ;;  %v2016_v17 = vmul.f32 0.65, %v2010_v4 }
 0x1a1   : > { %v2086_v15 = vsel %vm2083_vm15, %v2085_v9, %v2081_v19  ;;  %v1212_v22 = vpop.f32.mrf.mxu3  ;;  %v1384_v27 = vpop.f32.mrf.mxu0 }
 0x1a2   : > { %2163 = vst [vmem:[%s2494_s30] sm:$0xff] %v2086_v15  ;;  %v1213_v61 = vadd.f32 %v1212_v22, %v1187_v14 }
 0x1a3   : > { %v1320_v13 = vpop.f32.mrf.mxu2 }
 0x1a4   : > { %v2020_v23 = vadd.f32 %v2014_v20, %v1213_v61  ;;  %v1321_v21 = vadd.f32 %v1320_v13, %v1289_v1 }
 0x1a6   : > { %vm2026_vm0 = vcmp.gt.f32.partialorder %v2020_v23, 0.0  ;;  %v2344_v26 = vmul.f32 -1.442695, %v2020_v23  ;;  %2170 = vst [vmem:[%s2499_s14 + $0x8] sm:$0xff] %v2020_v23  ;;  %v1410_v24 = vpop.f32.mrf.mxu1 }
 0x1a7   : > { %v2338_v28 = vsel %vm2026_vm0, 1.0, %v2412_v50 }
 0x1a8   : > { %2044 = vst [vmem:[%s2489_s27 + $0x8] sm:$0xff] %v2338_v28  ;;  %2375 = vpow2.f32 %v2344_v26  ;;  %v2176_v29 = vsub.f32 %v2014_v20, %v2338_v28  ;;  %v813_v20 = vld [vmem:[%s3306_s4 + $0x20] sm:$0xff] }
 0x1a9   : > { %v1348_v30 = vpop.f32.mrf.mxu3 }
 0x1aa   : > { %2182 = vst [vmem:[%s3313_s11 + $0x8] sm:$0xff] %v2176_v29  ;;  %v1349_v32 = vadd.f32 %v1348_v30, %v1321_v21 }
 0x1ac   : > { %v1385_v33 = vadd.f32 %v1384_v27, %v1349_v32  ;;  %v2011_v32 = vld [vmem:[%s3313_s11 + $0x20] sm:$0xff] }
 0x1ae   : > { %v2376_v25 = vpop.eup %2375  ;;  %v1411_v38 = vadd.f32 %v1410_v24, %v1385_v33 }
 0x1af   : > { %v2068_v8 = vadd.f32 1.0, %v2376_v25 }
 0x1b0   : > { %v2021_v2 = vadd.f32 %v2015_v7, %v1411_v38 }
 0x1b1   : > { %2377 = vrcp.f32 %v2068_v8  ;;  %v2099_v41 = vand.u32 2147483648, %v2068_v8  ;;  %vm2093_vm2 = vweird.f32 %v2068_v8  ;;  %v2097_v45 = vand.u32 2147483647, %v2068_v8 }
 0x1b2   : > { %vm2027_vm1 = vcmp.gt.f32.partialorder %v2021_v2, 0.0  ;;  %v2345_v40 = vmul.f32 -1.442695, %v2021_v2  ;;  %2171 = vst [vmem:[%s2499_s14 + $0x10] sm:$0xff] %v2021_v2 }
 0x1b3   : > { %v2339_v39 = vsel %vm2027_vm1, 1.0, %v2412_v50  ;;  %v2100_v49 = vor.u32 1.1754944e-38, %v2099_v41  ;;  %vm2098_vm5 = vcmp.eq.f32.partialorder %v2097_v45, 8.507059e+37 }
 0x1b4   : > { %2045 = vst [vmem:[%s2489_s27 + $0x10] sm:$0xff] %v2339_v39  ;;  %2379 = vpow2.f32 %v2345_v40  ;;  %v2177_v35 = vsub.f32 %v2015_v7, %v2339_v39  ;;  %v2017_v7 = vmul.f32 0.65, %v2011_v32 }
 0x1b5   : > { %v1546_v63 = vpop.f32.mrf.mxu1 }
 0x1b6   : > { %2183 = vst [vmem:[%s3313_s11 + $0x10] sm:$0xff] %v2177_v35 }
 0x1b7   : > { %v2378_v55 = vpop.eup %2377  ;;  %v1518_v59 = vpop.f32.mrf.mxu0 }
 0x1b8   : > { %v2089_v36 = vmul.f32 %v2378_v55, %v2068_v8  ;;  %vm2094_vm3 = vweird.f32 %v2378_v55  ;;  %v814_v8 = vld [vmem:[%s3306_s4 + $0x28] sm:$0xff] }
 0x1b9   : > { %vm2095_vm4 = vmor %vm2093_vm2, %vm2094_vm3 }
 0x1ba   : > { %v2380_v51 = vpop.eup %2379  ;;  %v2090_v42 = vsub.f32 1.0, %v2089_v36 }
 0x1bb   : > { %v2069_v47 = vadd.f32 1.0, %v2380_v51  ;;  %v1440_v54 = vpop.f32.mrf.mxu2 }
 0x1bc   : > { %v2091_v48 = vmul.f32 %v2378_v55, %v2090_v42  ;;  %v1441_v12 = vadd.f32 %v1440_v54, %v812_v52 }
 0x1bd   : > { %2381 = vrcp.f32 %v2069_v47  ;;  %vm2108_vm6 = vweird.f32 %v2069_v47  ;;  %v2114_v46 = vand.u32 2147483648, %v2069_v47  ;;  %v2112_v60 = vand.u32 2147483647, %v2069_v47 }
 0x1be   : > { %v2092_v37 = vadd.f32 %v2378_v55, %v2091_v48 }
 0x1bf   : > { %v2115_v5 = vor.u32 1.1754944e-38, %v2114_v46  ;;  %vm2113_vm9 = vcmp.eq.f32.partialorder %v2112_v60, 8.507059e+37 }
 0x1c0   : > { %v2096_v34 = vsel %vm2095_vm4, %v2378_v55, %v2092_v37 }
 0x1c1   : > { %v2101_v10 = vsel %vm2098_vm5, %v2100_v49, %v2096_v34 }
 0x1c2   : > { %2164 = vst [vmem:[%s2494_s30 + $0x8] sm:$0xff] %v2101_v10 }
 0x1c3   : > { %v2382_v57 = vpop.eup %2381 }
 0x1c4   : > { %v2104_v43 = vmul.f32 %v2382_v57, %v2069_v47  ;;  %v1486_v58 = vpop.f32.mrf.mxu3  ;;  %vm2109_vm7 = vweird.f32 %v2382_v57 }
 0x1c5   : > { %v1487_v62 = vadd.f32 %v1486_v58, %v1441_v12  ;;  %vm2110_vm8 = vmor %vm2108_vm6, %vm2109_vm7 }
 0x1c6   : > { %v2105_v53 = vsub.f32 1.0, %v2104_v43 }
 0x1c7   : > { %v1519_v3 = vadd.f32 %v1518_v59, %v1487_v62  ;;  %v1582_v6 = vpop.f32.mrf.mxu2  ;;  %v2012_v59 = vld [vmem:[%s3313_s11 + $0x28] sm:$0xff] }
 0x1c8   : > { %v2106_v0 = vmul.f32 %v2382_v57, %v2105_v53 }
 0x1c9   : > { %v1547_v9 = vadd.f32 %v1546_v63, %v1519_v3 }
 0x1ca   : > { %v2107_v56 = vadd.f32 %v2382_v57, %v2106_v0  ;;  %v2018_v0 = vmul.f32 0.65, %v2012_v59 }
 0x1cb   : > { %v1583_v11 = vadd.f32 %v1582_v6, %v1547_v9 }
 0x1cc   : > { %v2111_v44 = vsel %vm2110_vm8, %v2382_v57, %v2107_v56 }
 0x1cd   : > { %v2116_v18 = vsel %vm2113_vm9, %v2115_v5, %v2111_v44  ;;  %v1638_v15 = vpop.f32.mrf.mxu0 }
 0x1ce   : > { %v1608_v14 = vpop.f32.mrf.mxu3  ;;  %2165 = vst [vmem:[%s2494_s30 + $0x10] sm:$0xff] %v2116_v18  ;;  %v1639_v23 = vadd.f32 %v1638_v15, %v813_v20 }
 0x1cf   : > { %v1609_v16 = vadd.f32 %v1608_v14, %v1583_v11 }
 0x1d1   : > { %v2022_v19 = vadd.f32 %v2016_v17, %v1609_v16 }
 0x1d3   : > { %vm2028_vm10 = vcmp.gt.f32.partialorder %v2022_v19, 0.0  ;;  %v2346_v22 = vmul.f32 -1.442695, %v2022_v19  ;;  %2172 = vst [vmem:[%s2499_s14 + $0x18] sm:$0xff] %v2022_v19 }
 0x1d4   : > { %v2340_v61 = vsel %vm2028_vm10, 1.0, %v2412_v50 }
 0x1d5   : > { %2046 = vst [vmem:[%s2489_s27 + $0x18] sm:$0xff] %v2340_v61  ;;  %2383 = vpow2.f32 %v2346_v22  ;;  %v2178_v1 = vsub.f32 %v2016_v17, %v2340_v61  ;;  %v1716_v21 = vpop.f32.mrf.mxu2 }
 0x1d7   : > { %2184 = vst [vmem:[%s3313_s11 + $0x18] sm:$0xff] %v2178_v1  ;;  %v1684_v13 = vpop.f32.mrf.mxu1 }
 0x1d8   : > { %v1685_v26 = vadd.f32 %v1684_v13, %v1639_v23 }
 0x1da   : > { %v1744_v28 = vpop.f32.mrf.mxu3  ;;  %v1717_v30 = vadd.f32 %v1716_v21, %v1685_v26 }
 0x1db   : > { %v2384_v29 = vpop.eup %2383 }
 0x1dc   : > { %v2070_v27 = vadd.f32 1.0, %v2384_v29  ;;  %v1745_v31 = vadd.f32 %v1744_v28, %v1717_v30 }
 0x1de   : > { %2385 = vrcp.f32 %v2070_v27  ;;  %vm2123_vm11 = vweird.f32 %v2070_v27  ;;  %v2127_v51 = vand.u32 2147483647, %v2070_v27  ;;  %v2129_v42 = vand.u32 2147483648, %v2070_v27 }
 0x1df   : > { %v1780_v24 = vpop.f32.mrf.mxu0 }
 0x1e0   : > { %v1781_v33 = vadd.f32 %v1780_v24, %v1745_v31  ;;  %v2130_v10 = vor.u32 1.1754944e-38, %v2129_v42  ;;  %vm2128_vm15 = vcmp.eq.f32.partialorder %v2127_v51, 8.507059e+37 }
 0x1e2   : > { %v1806_v25 = vpop.f32.mrf.mxu1 }
 0x1e3   : > { %v1807_v38 = vadd.f32 %v1806_v25, %v1781_v33 }
 0x1e4   : > { %v2386_v2 = vpop.eup %2385  ;;  %v1836_v35 = vpop.f32.mrf.mxu2 }
 0x1e5   : > { %v2119_v40 = vmul.f32 %v2386_v2, %v2070_v27  ;;  %v2023_v39 = vadd.f32 %v2017_v7, %v1807_v38  ;;  %v1837_v55 = vadd.f32 %v1836_v35, %v814_v8  ;;  %vm2124_vm13 = vweird.f32 %v2386_v2 }
 0x1e6   : > { %vm2125_vm14 = vmor %vm2123_vm11, %vm2124_vm13 }
 0x1e7   : > { %v2120_v36 = vsub.f32 1.0, %v2119_v40  ;;  %vm2029_vm12 = vcmp.gt.f32.partialorder %v2023_v39, 0.0  ;;  %v2347_v41 = vmul.f32 -1.442695, %v2023_v39  ;;  %2173 = vst [vmem:[%s2499_s14 + $0x20] sm:$0xff] %v2023_v39  ;;  %v1882_v47 = vpop.f32.mrf.mxu3 }
 0x1e8   : > { %v2341_v45 = vsel %vm2029_vm12, 1.0, %v2412_v50  ;;  %v1914_v48 = vpop.f32.mrf.mxu0  ;;  %v1883_v52 = vadd.f32 %v1882_v47, %v1837_v55 }
 0x1e9   : > { %v2121_v49 = vmul.f32 %v2386_v2, %v2120_v36  ;;  %2047 = vst [vmem:[%s2489_s27 + $0x20] sm:$0xff] %v2341_v45  ;;  %2387 = vpow2.f32 %v2347_v41  ;;  %v2179_v37 = vsub.f32 %v2017_v7, %v2341_v45 }
 0x1ea   : > { %v1915_v34 = vadd.f32 %v1914_v48, %v1883_v52 }
 0x1eb   : > { %v2122_v54 = vadd.f32 %v2386_v2, %v2121_v49  ;;  %2185 = vst [vmem:[%s3313_s11 + $0x20] sm:$0xff] %v2179_v37 }
 0x1ec   : > { %v1942_v57 = vpop.f32.mrf.mxu1 }
 0x1ed   : > { %v2126_v12 = vsel %vm2125_vm14, %v2386_v2, %v2122_v54  ;;  %v1978_v43 = vpop.f32.mrf.mxu2  ;;  %v1943_v58 = vadd.f32 %v1942_v57, %v1915_v34 }
 0x1ee   : > { %v2131_v46 = vsel %vm2128_vm15, %v2130_v10, %v2126_v12 }
 0x1ef   : > { %v2388_v53 = vpop.eup %2387  ;;  %2166 = vst [vmem:[%s2494_s30 + $0x18] sm:$0xff] %v2131_v46  ;;  %v1979_v62 = vadd.f32 %v1978_v43, %v1943_v58  ;;  %v2004_v63 = vpop.f32.mrf.mxu3 }
 0x1f0   : > { %v2071_v60 = vadd.f32 1.0, %v2388_v53 }
 0x1f1   : > { %v2005_v3 = vadd.f32 %v2004_v63, %v1979_v62 }
 0x1f2   : > { %2389 = vrcp.f32 %v2071_v60  ;;  %v2144_v17 = vand.u32 2147483648, %v2071_v60  ;;  %v2142_v14 = vand.u32 2147483647, %v2071_v60  ;;  %vm2138_vm2 = vweird.f32 %v2071_v60 }
 0x1f3   : > { %v2024_v5 = vadd.f32 %v2018_v0, %v2005_v3 }
 0x1f4   : > { %v2145_v20 = vor.u32 1.1754944e-38, %v2144_v17  ;;  %vm2143_vm4 = vcmp.eq.f32.partialorder %v2142_v14, 8.507059e+37 }
 0x1f5   : > { %vm2030_vm0 = vcmp.gt.f32.partialorder %v2024_v5, 0.0  ;;  %v2348_v6 = vmul.f32 -1.442695, %v2024_v5  ;;  %2174 = vst [vmem:[%s2499_s14 + $0x28] sm:$0xff] %v2024_v5 }
 0x1f6   : > { %v2342_v56 = vsel %vm2030_vm0, 1.0, %v2412_v50 }
 0x1f7   : > { %2048 = vst [vmem:[%s2489_s27 + $0x28] sm:$0xff] %v2342_v56  ;;  %2391 = vpow2.f32 %v2348_v6  ;;  %v2180_v44 = vsub.f32 %v2018_v0, %v2342_v56 }
 0x1f8   : > { %v2390_v4 = vpop.eup %2389 }
 0x1f9   : > { %v2134_v9 = vmul.f32 %v2390_v4, %v2071_v60  ;;  %2186 = vst [vmem:[%s3313_s11 + $0x28] sm:$0xff] %v2180_v44  ;;  %vm2139_vm1 = vweird.f32 %v2390_v4 }
 0x1fa   : > { %vm2140_vm3 = vmor %vm2138_vm2, %vm2139_vm1 }
 0x1fb   : > { %v2135_v11 = vsub.f32 1.0, %v2134_v9 }
 0x1fd   : > { %v2136_v18 = vmul.f32 %v2390_v4, %v2135_v11  ;;  %v2392_v16 = vpop.eup %2391 }
 0x1fe   : > { %v2072_v50 = vadd.f32 1.0, %v2392_v16 }
 0x1ff   : > { %v2137_v19 = vadd.f32 %v2390_v4, %v2136_v18 }
 0x200   : > { %2393 = vrcp.f32 %v2072_v50  ;;  %v2159_v13 = vand.u32 2147483648, %v2072_v50  ;;  %v2157_v21 = vand.u32 2147483647, %v2072_v50  ;;  %vm2153_vm6 = vweird.f32 %v2072_v50 }
 0x201   : > { %v2141_v15 = vsel %vm2140_vm3, %v2390_v4, %v2137_v19 }
 0x202   : > { %v2146_v22 = vsel %vm2143_vm4, %v2145_v20, %v2141_v15  ;;  %v2160_v29 = vor.u32 1.1754944e-38, %v2159_v13  ;;  %vm2158_vm8 = vcmp.eq.f32.partialorder %v2157_v21, 8.507059e+37 }
 0x203   : > { %2167 = vst [vmem:[%s2494_s30 + $0x20] sm:$0xff] %v2146_v22 }
 0x206   : > { %v2394_v61 = vpop.eup %2393 }
 0x207   : > { %v2149_v1 = vmul.f32 %v2394_v61, %v2072_v50  ;;  %vm2154_vm5 = vweird.f32 %v2394_v61 }
 0x208   : > { %vm2155_vm7 = vmor %vm2153_vm6, %vm2154_vm5 }
 0x209   : > { %v2150_v23 = vsub.f32 1.0, %v2149_v1 }
 0x20b   : > { %v2151_v26 = vmul.f32 %v2394_v61, %v2150_v23 }
 0x20d   : > { %v2152_v28 = vadd.f32 %v2394_v61, %v2151_v26 }
 0x20f   : > { %v2156_v30 = vsel %vm2155_vm7, %v2394_v61, %v2152_v28 }
 0x210   : > { %v2161_v27 = vsel %vm2158_vm8, %v2160_v29, %v2156_v30 }
 0x211   : > { %2168 = vst [vmem:[%s2494_s30 + $0x28] sm:$0xff] %v2161_v27 }
 0x212 PF: > { %s22_s17 = sadd.s32 1, %s2401_s17  }
 0x213   : > { %p19_p5 = scmp.ge.s32.totalorder %s22_s17, 10  }
 0x215   :  { %21 = sbr.rel (!%p19_p5) target bundleno = 1 (0x1), region = 126 }

</bundles_post_ra>
